<compile_context>
chip_gen: v5e
topology: v5e:2x2
jax: 0.10.0
libtpu: 0.0.40
codegen_flags: <defaults>
</compile_context>

<pallas_src>
import functools

import jax
import jax.numpy as jnp
from jax.experimental import pallas as pl
from jax.experimental.pallas import tpu as pltpu


def _align8(v):
    return (v + 7) // 8 * 8


_VMEM_LIMIT = 32 * 1024 * 1024   # raise v5e's 16 MiB default; safe on v6e/v7x


# ------------------------- in-kernel building blocks ------------------------ #

def _store_padded(pad_ref, x4d, pad, H, W, *, zero_halo):
    """Write x4d into the interior of a zero-halo'd, sublane-aligned scratch.

    Only the halo rows/cols are zeroed (O(perimeter)); the interior store
    covers the rest.  pad_ref: (B, H+2*pad, Wp, C), Wp = round_up(W+2*pad, 8).
    """
    B, Hp, Wp, C = pad_ref.shape
    if zero_halo:
        pad_ref[:, pl.ds(0, pad), :, :] = jnp.zeros((B, pad, Wp, C), pad_ref.dtype)
        pad_ref[:, pl.ds(pad + H, Hp - pad - H), :, :] = jnp.zeros(
            (B, Hp - pad - H, Wp, C), pad_ref.dtype)
        pad_ref[:, pl.ds(pad, H), pl.ds(0, pad), :] = jnp.zeros(
            (B, H, pad, C), pad_ref.dtype)
        pad_ref[:, pl.ds(pad, H), pl.ds(pad + W, Wp - pad - W), :] = jnp.zeros(
            (B, H, Wp - pad - W, C), pad_ref.dtype)
    pad_ref[:, pl.ds(pad, H), pl.ds(pad, W), :] = x4d.astype(pad_ref.dtype)


def _conv_dense_taps(pad_ref, w_ref, b_ref, *, K, H, W, C, B):
    """Dense KxK conv (padding already in pad_ref) as per-tap MXU matmuls.

    No im2col patch matrix is materialized; each tap is one [B*HW, C] x [C, C]
    dot accumulated in f32 (w_ref is tap-major: (K*K, C, C) bf16).
    """
    M = B * H * W
    acc = jnp.zeros((M, C), jnp.float32)
    for kh in range(K):
        for kw in range(K):
            xs = pad_ref[:, pl.ds(kh, H), pl.ds(kw, W), :]
            xs = xs.reshape(M, C).astype(jnp.bfloat16)
            acc = acc + jnp.dot(xs, w_ref[kh * K + kw],
                                preferred_element_type=jnp.float32)
    return acc + b_ref[...]


def _conv_depthwise_taps(pad_ref, w_ref, b_ref, *, K, H, W, C, B, dil=1):
    """Depthwise KxK conv (optionally dilated) as tap-accumulated VPU multiplies."""
    # TODO(synk): bf16 operands would halve VALU slot use on v6e/v7x; kept f32
    #             so the same kernel is correct/fast on v5e (no bf16 VPU).
    acc = jnp.zeros((B, H, W, C), jnp.float32)
    for kh in range(K):
        for kw in range(K):
            xs = pad_ref[:, pl.ds(kh * dil, H), pl.ds(kw * dil, W), :]
            wt = w_ref[pl.ds(kh * K + kw, 1), :].reshape(1, 1, 1, C)
            acc = acc + xs.astype(jnp.float32) * wt.astype(jnp.float32)
    acc = acc + b_ref[...].astype(jnp.float32).reshape(1, 1, 1, C)
    return acc.reshape(B * H * W, C)


# ------------------------------ fused kernels ------------------------------- #

def _sem_kernel(x_ref,
                pw1_w, pw1_b, dw1_w, dw1_b,
                c3_w, c3_b,
                pw2_w, pw2_b, dw2_w, dw2_b,
                head_w, head_b, cls_w, cls_b,
                feat_ref, logit_ref,
                pad1,
                *, H, W, C, B):
    HW = H * W
    M = B * HW
    x = x_ref[...].astype(jnp.bfloat16).reshape(M, C)

    # SCSS_Conv(k=1): BN folded into 1x1 conv -> LeakyReLU -> 1x1 depthwise -> ReLU
    y = jnp.dot(x, pw1_w[...], preferred_element_type=jnp.float32) + pw1_b[...]
    y = jnp.maximum(y, 0.01 * y)
    y = y * dw1_w[...] + dw1_b[...]
    y = jnp.maximum(y, 0.0)

    # Conv2d 3x3, pad=1: per-tap MXU accumulation (no im2col buffer)
    _store_padded(pad1, y.reshape(B, H, W, C), 1, H, W, zero_halo=True)
    y = _conv_dense_taps(pad1, c3_w, c3_b, K=3, H=H, W=W, C=C, B=B)

    # SCSS_Conv(k=3): folded-BN 1x1 conv -> LeakyReLU -> 3x3 depthwise -> ReLU
    y = jnp.dot(y.astype(jnp.bfloat16), pw2_w[...],
                preferred_element_type=jnp.float32) + pw2_b[...]
    y = jnp.maximum(y, 0.01 * y)
    # halo of pad1 is still zero from the first fill -> rewrite interior only
    _store_padded(pad1, y.reshape(B, H, W, C), 1, H, W, zero_halo=False)
    y = _conv_depthwise_taps(pad1, dw2_w, dw2_b, K=3, H=H, W=W, C=C, B=B, dil=1)
    y = jnp.maximum(y, 0.0)   # trailing nn.ReLU() of the Sequential is a no-op

    # afterlayer1 (both BN affines folded into the Linear) fused with the global
    # average pool, plus the classifier: the feature map never hits HBM.
    pooled = y.reshape(B, HW, C).sum(axis=1) * (1.0 / HW)              # [B, C]
    feat = jnp.dot(pooled.astype(jnp.bfloat16), head_w[...],
                   preferred_element_type=jnp.float32) + head_b[...]
    feat_ref[...] = feat.reshape(feat_ref.shape).astype(feat_ref.dtype)
    logits = jnp.dot(feat.astype(jnp.bfloat16), cls_w[...],
                     preferred_element_type=jnp.float32) + cls_b[...]
    logit_ref[...] = logits.reshape(logit_ref.shape).astype(logit_ref.dtype)


def _dom_kernel(x_ref,
                pw1_w, pw1_b, dw1_w, dw1_b,
                c7_w, c7_b,
                pw2_w, pw2_b, dw2_w, dw2_b,
                dwd_w, dwd_b, pwf_w, pwf_b,
                head_w, head_b,
                feat_ref,
                pad3, pad1, pad2,
                *, H, W, C, B):
    HW = H * W
    M = B * HW
    x = x_ref[...].astype(jnp.bfloat16).reshape(M, C)

    # SCSS_Conv(k=1)
    y = jnp.dot(x, pw1_w[...], preferred_element_type=jnp.float32) + pw1_b[...]
    y = jnp.maximum(y, 0.01 * y)
    y = y * dw1_w[...] + dw1_b[...]
    y = jnp.maximum(y, 0.0)

    # Conv2d 7x7, pad=3: 49 per-tap matmuls (no 49*C-deep patch matrix)
    _store_padded(pad3, y.reshape(B, H, W, C), 3, H, W, zero_halo=True)
    y = _conv_dense_taps(pad3, c7_w, c7_b, K=7, H=H, W=W, C=C, B=B)

    # SCSS_Conv(k=3)
    y = jnp.dot(y.astype(jnp.bfloat16), pw2_w[...],
                preferred_element_type=jnp.float32) + pw2_b[...]
    y = jnp.maximum(y, 0.01 * y)
    _store_padded(pad1, y.reshape(B, H, W, C), 1, H, W, zero_halo=True)
    y = _conv_depthwise_taps(pad1, dw2_w, dw2_b, K=3, H=H, W=W, C=C, B=B, dil=1)
    y = jnp.maximum(y, 0.0)

    # Depthwise Conv2d 3x3, pad=2, dilation=2 (no activation)
    _store_padded(pad2, y.reshape(B, H, W, C), 2, H, W, zero_halo=True)
    y = _conv_depthwise_taps(pad2, dwd_w, dwd_b, K=3, H=H, W=W, C=C, B=B, dil=2)

    # Conv2d 1x1 (+bias) -> ReLU
    y = jnp.dot(y.astype(jnp.bfloat16), pwf_w[...],
                preferred_element_type=jnp.float32) + pwf_b[...]
    y = jnp.maximum(y, 0.0)

    # afterlayer2 fused with the global average pool
    pooled = y.reshape(B, HW, C).sum(axis=1) * (1.0 / HW)
    feat = jnp.dot(pooled.astype(jnp.bfloat16), head_w[...],
                   preferred_element_type=jnp.float32) + head_b[...]
    feat_ref[...] = feat.reshape(feat_ref.shape).astype(feat_ref.dtype)


# -------------------------------- wrappers ---------------------------------- #

def _pick_block_batch(N, HW, target_rows=256):
    """Images per grid step: raise the matmul M toward >=256 rows while keeping
    the grid >=2-wide (v7x megacore) and B a divisor of N."""
    best = 1
    for b in range(1, N + 1):
        if N % b != 0:
            continue
        if N >= 2 and N // b < 2:
            continue
        best = b
        if b * HW >= target_rows:
            break
    return best


def _const_spec(w):
    # TODO(synk): pipeline_mode=pl.Buffered(1) would avoid double-buffering the
    #             constant-index weights (matters for dom_c7_w on v7x's 64 MiB).
    return pl.BlockSpec(w.shape, lambda n, _r=w.ndim: (0,) * _r)


def sem_forward(x, p):
    """Fused sematic_encoder + afterlayer1 + classifier (one pallas_call)."""
    N, H, W, C = x.shape
    HW = H * W
    B = _pick_block_batch(N, HW)
    E = p["after1_w"].shape[1]
    CP = p["cls_w"].shape[1]
    weights = [p["sem1_pw_w"], p["sem1_pw_b"], p["sem1_dw_w"], p["sem1_dw_b"],
               p["sem_c3_w"], p["sem_c3_b"],
               p["sem2_pw_w"], p["sem2_pw_b"], p["sem2_dw_w"], p["sem2_dw_b"],
               p["after1_w"], p["after1_b"], p["cls_w"], p["cls_b"]]
    feat, logits = pl.pallas_call(
        functools.partial(_sem_kernel, H=H, W=W, C=C, B=B),
        grid=(N // B,),
        in_specs=[pl.BlockSpec((B, H, W, C), lambda n: (n, 0, 0, 0))]
                 + [_const_spec(w) for w in weights],
        out_specs=(pl.BlockSpec((B, 1, E), lambda n: (n, 0, 0)),
                   pl.BlockSpec((B, 1, CP), lambda n: (n, 0, 0))),
        out_shape=(jax.ShapeDtypeStruct((N, 1, E), jnp.float32),
                   jax.ShapeDtypeStruct((N, 1, CP), jnp.float32)),
        scratch_shapes=[pltpu.VMEM((B, H + 2, _align8(W + 2), C), jnp.float32)],
        compiler_params=pltpu.CompilerParams(
            dimension_semantics=("parallel",),
            vmem_limit_bytes=_VMEM_LIMIT),
    )(x, *weights)
    return feat.reshape(N, E), logits.reshape(N, CP)


def dom_forward(x, p):
    """Fused domain_encoder + afterlayer2 (one pallas_call)."""
    N, H, W, C = x.shape
    HW = H * W
    B = _pick_block_batch(N, HW)
    E = p["after2_w"].shape[1]
    weights = [p["dom1_pw_w"], p["dom1_pw_b"], p["dom1_dw_w"], p["dom1_dw_b"],
               p["dom_c7_w"], p["dom_c7_b"],
               p["dom2_pw_w"], p["dom2_pw_b"], p["dom2_dw_w"], p["dom2_dw_b"],
               p["dom_dwd_w"], p["dom_dwd_b"], p["dom_pwf_w"], p["dom_pwf_b"],
               p["after2_w"], p["after2_b"]]
    feat = pl.pallas_call(
        functools.partial(_dom_kernel, H=H, W=W, C=C, B=B),
        grid=(N // B,),
        in_specs=[pl.BlockSpec((B, H, W, C), lambda n: (n, 0, 0, 0))]
                 + [_const_spec(w) for w in weights],
        out_specs=pl.BlockSpec((B, 1, E), lambda n: (n, 0, 0)),
        out_shape=jax.ShapeDtypeStruct((N, 1, E), jnp.float32),
        scratch_shapes=[pltpu.VMEM((B, H + 6, _align8(W + 6), C), jnp.float32),
                        pltpu.VMEM((B, H + 2, _align8(W + 2), C), jnp.float32),
                        pltpu.VMEM((B, H + 4, _align8(W + 4), C), jnp.float32)],
        compiler_params=pltpu.CompilerParams(
            dimension_semantics=("parallel",),
            vmem_limit_bytes=_VMEM_LIMIT),
    )(x, *weights)
    return feat.reshape(N, E)


# ------------------------- parameter construction --------------------------- #
# Random parameters in PyTorch layouts, folded/transposed/cast for the kernels.

def _fold_bn(gamma, beta, mean, var, eps=1e-5):
    scale = gamma * jax.lax.rsqrt(var + eps)
    return scale, beta - mean * scale


def _init_bn(key, c):
    k1, k2, k3 = jax.random.split(key, 3)
    gamma = 1.0 + 0.1 * jax.random.normal(k1, (c,), jnp.float32)
    beta = 0.1 * jax.random.normal(k2, (c,), jnp.float32)
    mean = 0.1 * jax.random.normal(k3, (c,), jnp.float32)
    var = jnp.ones((c,), jnp.float32)
    return _fold_bn(gamma, beta, mean, var)


def _make_scss(key, cin, cout, k):
    # SCSS_Conv: BN -> 1x1 conv (no bias) -> LeakyReLU -> depthwise KxK (+bias) -> ReLU
    ks = jax.random.split(key, 4)
    scale, shift = _init_bn(ks[0], cin)
    pw = 0.05 * jax.random.normal(ks[1], (cout, cin, 1, 1), jnp.float32)
    dw = 0.05 * jax.random.normal(ks[2], (cout, 1, k, k), jnp.float32)
    db = 0.05 * jax.random.normal(ks[3], (cout,), jnp.float32)
    Wpw = pw[:, :, 0, 0].T                                    # [cin, cout]
    pw_w = (scale[:, None] * Wpw).astype(jnp.bfloat16)        # BN folded in
    pw_b = (shift @ Wpw).reshape(1, cout).astype(jnp.float32)
    if k == 1:
        dw_w = dw[:, 0, 0, 0].reshape(1, cout).astype(jnp.float32)
    else:
        dw_w = jnp.transpose(dw[:, 0], (1, 2, 0)).reshape(k * k, cout).astype(jnp.float32)
    dw_b = db.reshape(1, cout).astype(jnp.float32)
    return pw_w, pw_b, dw_w, dw_b


def _make_dense(key, cin, cout, k):
    k1, k2 = jax.random.split(key)
    w = 0.05 * jax.random.normal(k1, (cout, cin, k, k), jnp.float32)
    b = 0.05 * jax.random.normal(k2, (cout,), jnp.float32)
    # tap-major stack (k*k, cin, cout): kernel does acc += x_tap @ w[tap]
    wp = jnp.transpose(w, (2, 3, 1, 0)).reshape(k * k, cin, cout).astype(jnp.bfloat16)
    return wp, b.reshape(1, cout).astype(jnp.float32)


def _make_pw(key, cin, cout):
    k1, k2 = jax.random.split(key)
    w = 0.05 * jax.random.normal(k1, (cout, cin, 1, 1), jnp.float32)
    b = 0.05 * jax.random.normal(k2, (cout,), jnp.float32)
    return w[:, :, 0, 0].T.astype(jnp.bfloat16), b.reshape(1, cout).astype(jnp.float32)


def _make_head(key, c, embed_dim):
    # BN2d -> avgpool -> BN1d -> Linear, with both BN affines folded into the Linear.
    ks = jax.random.split(key, 4)
    s2, h2 = _init_bn(ks[0], c)
    s1, h1 = _init_bn(ks[1], c)
    W = 0.05 * jax.random.normal(ks[2], (c, embed_dim), jnp.float32)
    b = 0.05 * jax.random.normal(ks[3], (embed_dim,), jnp.float32)
    Wf = ((s2 * s1)[:, None] * W).astype(jnp.bfloat16)
    bf = ((h2 * s1 + h1) @ W + b).reshape(1, embed_dim).astype(jnp.float32)
    return Wf, bf


def init_extractor(key, embed_dim=128, num_class=7, C=128):
    ks = jax.random.split(key, 12)
    s1w, s1b, s1dw, s1db = _make_scss(ks[0], C, C, 1)
    c3w, c3b = _make_dense(ks[1], C, C, 3)
    s2w, s2b, s2dw, s2db = _make_scss(ks[2], C, C, 3)
    d1w, d1b, d1dw, d1db = _make_scss(ks[3], C, C, 1)
    c7w, c7b = _make_dense(ks[4], C, C, 7)
    d2w, d2b, d2dw, d2db = _make_scss(ks[5], C, C, 3)
    kdw1, kdw2 = jax.random.split(ks[6])
    dwd_w = 0.05 * jax.random.normal(kdw1, (C, 1, 3, 3), jnp.float32)
    dwd_b = 0.05 * jax.random.normal(kdw2, (C,), jnp.float32)
    pwf_w, pwf_b = _make_pw(ks[7], C, C)
    a1w, a1b = _make_head(ks[8], C, embed_dim)
    a2w, a2b = _make_head(ks[9], C, embed_dim)
    # classifier Linear, zero-padded to a 128-lane-dense output; slice in wrapper.
    cls_pad = max(128, _align8(num_class) * 16 // 16)
    cls_pad = ((num_class + 127) // 128) * 128
    kcw, kcb = jax.random.split(ks[10])
    cls_w = 0.05 * jax.random.normal(kcw, (embed_dim, num_class), jnp.float32)
    cls_b = 0.05 * jax.random.normal(kcb, (num_class,), jnp.float32)
    cls_w_pad = jnp.zeros((embed_dim, cls_pad), jnp.float32).at[:, :num_class].set(cls_w)
    cls_b_pad = jnp.zeros((1, cls_pad), jnp.float32).at[0, :num_class].set(cls_b)
    # domain_classifier exists in the module but is never used by forward().
    _ = 0.05 * jax.random.normal(ks[11], (embed_dim, 2), jnp.float32)
    return dict(
        sem1_pw_w=s1w, sem1_pw_b=s1b, sem1_dw_w=s1dw, sem1_dw_b=s1db,
        sem_c3_w=c3w, sem_c3_b=c3b,
        sem2_pw_w=s2w, sem2_pw_b=s2b, sem2_dw_w=s2dw, sem2_dw_b=s2db,
        dom1_pw_w=d1w, dom1_pw_b=d1b, dom1_dw_w=d1dw, dom1_dw_b=d1db,
        dom_c7_w=c7w, dom_c7_b=c7b,
        dom2_pw_w=d2w, dom2_pw_b=d2b, dom2_dw_w=d2dw, dom2_dw_b=d2db,
        dom_dwd_w=jnp.transpose(dwd_w[:, 0], (1, 2, 0)).reshape(9, C).astype(jnp.float32),
        dom_dwd_b=dwd_b.reshape(1, C).astype(jnp.float32),
        dom_pwf_w=pwf_w, dom_pwf_b=pwf_b,
        after1_w=a1w, after1_b=a1b,
        after2_w=a2w, after2_b=a2b,
        cls_w=cls_w_pad.astype(jnp.bfloat16),
        cls_b=cls_b_pad,
    )


# ------------------------------ forward pass -------------------------------- #

def extractor_forward(params, x_nchw, mode="test", *, num_class=7):
    # NCHW -> NHWC; bf16 halves the HBM read of x (it feeds bf16 MXU ops anyway).
    x = jnp.transpose(x_nchw, (0, 2, 3, 1)).astype(jnp.bfloat16)

    # sematic_encoder + afterlayer1 + classifier: one fused pallas_call.
    feat_class, logits_pad = sem_forward(x, params)
    pre_class = logits_pad[:, :num_class]

    if mode == "test":
        return pre_class, feat_class

    # domain_encoder + afterlayer2: one fused pallas_call.
    # TODO(synk): on v7x, sem+dom could share one pallas_call so x is read once.
    feat_domain = dom_forward(x, params)
    return pre_class, feat_class, feat_domain


# ---------------------------------- main ------------------------------------ #

if __name__ == "__main__":
    key = jax.random.PRNGKey(0)
    pkey, xkey = jax.random.split(key)

    EMBED_DIM, NUM_CLASS = 128, 7
    params = init_extractor(pkey, embed_dim=EMBED_DIM, num_class=NUM_CLASS, C=128)

    # Module hard-codes 128 input channels; small batch / spatial for the demo.
    x = jax.random.normal(xkey, (2, 128, 8, 8), jnp.float32)

    fwd = jax.jit(extractor_forward, static_argnames=("mode", "num_class"))

    logits, feat = fwd(params, x, mode="test", num_class=NUM_CLASS)
    jax.block_until_ready((logits, feat))
    assert logits.shape == (2, NUM_CLASS) and feat.shape == (2, EMBED_DIM)

    outs = fwd(params, x, mode="train", num_class=NUM_CLASS)
    jax.block_until_ready(outs)
    assert outs[0].shape == (2, NUM_CLASS)
    assert outs[1].shape == (2, EMBED_DIM)
    assert outs[2].shape == (2, EMBED_DIM)

    print("KERNEL_OK")
</pallas_src>

<mosaic_0001>
module attributes {stable_mosaic.version = 11 : i64} {
  func.func @_sem_kernel(%arg0: i32, %arg1: memref<1x8x8x128xbf16, #tpu.memory_space<vmem>>, %arg2: memref<128x128xbf16, #tpu.memory_space<vmem>>, %arg3: memref<1x128xf32, #tpu.memory_space<vmem>>, %arg4: memref<1x128xf32, #tpu.memory_space<vmem>>, %arg5: memref<1x128xf32, #tpu.memory_space<vmem>>, %arg6: memref<9x128x128xbf16, #tpu.memory_space<vmem>>, %arg7: memref<1x128xf32, #tpu.memory_space<vmem>>, %arg8: memref<128x128xbf16, #tpu.memory_space<vmem>>, %arg9: memref<1x128xf32, #tpu.memory_space<vmem>>, %arg10: memref<9x128xf32, #tpu.memory_space<vmem>>, %arg11: memref<1x128xf32, #tpu.memory_space<vmem>>, %arg12: memref<128x128xbf16, #tpu.memory_space<vmem>>, %arg13: memref<1x128xf32, #tpu.memory_space<vmem>>, %arg14: memref<128x128xbf16, #tpu.memory_space<vmem>>, %arg15: memref<1x128xf32, #tpu.memory_space<vmem>>, %arg16: memref<1x1x128xf32, #tpu.memory_space<vmem>>, %arg17: memref<1x1x128xf32, #tpu.memory_space<vmem>>, %arg18: memref<1x10x16x128xf32, #tpu.memory_space<vmem>>) attributes {dimension_semantics = [#tpu.dimension_semantics<parallel>], iteration_bounds = array<i64: 2>, scalar_prefetch = 0 : i64, scratch_operands = 1 : i64, tpu.core_type = #tpu.core_type<tc>, window_params = [{transform_indices = @transform_0, window_bounds = array<i64: 1, 8, 8, 128>}, {pipeline_mode = #tpu.pipeline_mode<synchronous>, transform_indices = @transform_1, window_bounds = array<i64: 128, 128>}, {pipeline_mode = #tpu.pipeline_mode<synchronous>, transform_indices = @transform_2, window_bounds = array<i64: 1, 128>}, {pipeline_mode = #tpu.pipeline_mode<synchronous>, transform_indices = @transform_3, window_bounds = array<i64: 1, 128>}, {pipeline_mode = #tpu.pipeline_mode<synchronous>, transform_indices = @transform_4, window_bounds = array<i64: 1, 128>}, {pipeline_mode = #tpu.pipeline_mode<synchronous>, transform_indices = @transform_5, window_bounds = array<i64: 9, 128, 128>}, {pipeline_mode = #tpu.pipeline_mode<synchronous>, transform_indices = @transform_6, window_bounds = array<i64: 1, 128>}, {pipeline_mode = #tpu.pipeline_mode<synchronous>, transform_indices = @transform_7, window_bounds = array<i64: 128, 128>}, {pipeline_mode = #tpu.pipeline_mode<synchronous>, transform_indices = @transform_8, window_bounds = array<i64: 1, 128>}, {pipeline_mode = #tpu.pipeline_mode<synchronous>, transform_indices = @transform_9, window_bounds = array<i64: 9, 128>}, {pipeline_mode = #tpu.pipeline_mode<synchronous>, transform_indices = @transform_10, window_bounds = array<i64: 1, 128>}, {pipeline_mode = #tpu.pipeline_mode<synchronous>, transform_indices = @transform_11, window_bounds = array<i64: 128, 128>}, {pipeline_mode = #tpu.pipeline_mode<synchronous>, transform_indices = @transform_12, window_bounds = array<i64: 1, 128>}, {pipeline_mode = #tpu.pipeline_mode<synchronous>, transform_indices = @transform_13, window_bounds = array<i64: 128, 128>}, {pipeline_mode = #tpu.pipeline_mode<synchronous>, transform_indices = @transform_14, window_bounds = array<i64: 1, 128>}, {transform_indices = @transform_15, window_bounds = array<i64: 1, 1, 128>}, {transform_indices = @transform_16, window_bounds = array<i64: 1, 1, 128>}]} {
    %c0 = arith.constant 0 : index
    %c0_0 = arith.constant 0 : index
    %c0_1 = arith.constant 0 : index
    %c0_2 = arith.constant 0 : index
    %0 = vector.load %arg1[%c0, %c0_0, %c0_1, %c0_2] : memref<1x8x8x128xbf16, #tpu.memory_space<vmem>>, vector<1x8x8x128xbf16>
    %1 = vector.shape_cast %0 : vector<1x8x8x128xbf16> to vector<64x128xbf16>
    %c0_3 = arith.constant 0 : index
    %c0_4 = arith.constant 0 : index
    %2 = vector.load %arg2[%c0_3, %c0_4] : memref<128x128xbf16, #tpu.memory_space<vmem>>, vector<128x128xbf16>
    %cst = arith.constant dense<0.000000e+00> : vector<64x128xf32>
    %3 = tpu.matmul %1, %2, %cst {dimension_numbers = #tpu.dot_dimension_numbers<[1], [0], [0], [1], [0, 0, 1, 1], [], []>} : vector<64x128xbf16>, vector<128x128xbf16>, vector<64x128xf32> -> vector<64x128xf32>
    %c0_5 = arith.constant 0 : index
    %c0_6 = arith.constant 0 : index
    %4 = vector.load %arg3[%c0_5, %c0_6] : memref<1x128xf32, #tpu.memory_space<vmem>>, vector<1x128xf32>
    %5 = vector.broadcast %4 : vector<1x128xf32> to vector<64x128xf32>
    %6 = arith.addf %3, %5 : vector<64x128xf32>
    %cst_7 = arith.constant 0.00999999977 : f32
    %7 = vector.broadcast %cst_7 : f32 to vector<64x128xf32>
    %8 = arith.mulf %7, %6 : vector<64x128xf32>
    %9 = arith.maximumf %6, %8 : vector<64x128xf32>
    %c0_8 = arith.constant 0 : index
    %c0_9 = arith.constant 0 : index
    %10 = vector.load %arg4[%c0_8, %c0_9] : memref<1x128xf32, #tpu.memory_space<vmem>>, vector<1x128xf32>
    %11 = vector.broadcast %10 : vector<1x128xf32> to vector<64x128xf32>
    %12 = arith.mulf %9, %11 : vector<64x128xf32>
    %c0_10 = arith.constant 0 : index
    %c0_11 = arith.constant 0 : index
    %13 = vector.load %arg5[%c0_10, %c0_11] : memref<1x128xf32, #tpu.memory_space<vmem>>, vector<1x128xf32>
    %14 = vector.broadcast %13 : vector<1x128xf32> to vector<64x128xf32>
    %15 = arith.addf %12, %14 : vector<64x128xf32>
    %cst_12 = arith.constant 0.000000e+00 : f32
    %16 = vector.broadcast %cst_12 : f32 to vector<64x128xf32>
    %17 = arith.maximumf %15, %16 : vector<64x128xf32>
    %18 = vector.shape_cast %17 : vector<64x128xf32> to vector<1x8x8x128xf32>
    %cst_13 = arith.constant 0.000000e+00 : f32
    %19 = vector.broadcast %cst_13 : f32 to vector<1x1x16x128xf32>
    %c0_14 = arith.constant 0 : index
    %c0_15 = arith.constant 0 : index
    %c0_16 = arith.constant 0 : index
    %c0_17 = arith.constant 0 : index
    %20 = vector.load %arg18[%c0_14, %c0_15, %c0_16, %c0_17] : memref<1x10x16x128xf32, #tpu.memory_space<vmem>>, vector<1x1x16x128xf32>
    tpu.vector_store %arg18[%c0_14, %c0_15, %c0_16, %c0_17], %19 {strides = array<i32>} : memref<1x10x16x128xf32, #tpu.memory_space<vmem>>, vector<1x1x16x128xf32>,
    %cst_18 = arith.constant 0.000000e+00 : f32
    %21 = vector.broadcast %cst_18 : f32 to vector<1x1x16x128xf32>
    %c0_19 = arith.constant 0 : index
    %c9 = arith.constant 9 : index
    %c0_20 = arith.constant 0 : index
    %c0_21 = arith.constant 0 : index
    %22 = vector.load %arg18[%c0_19, %c9, %c0_20, %c0_21] : memref<1x10x16x128xf32, #tpu.memory_space<vmem>>, vector<1x1x16x128xf32>
    tpu.vector_store %arg18[%c0_19, %c9, %c0_20, %c0_21], %21 {strides = array<i32>} : memref<1x10x16x128xf32, #tpu.memory_space<vmem>>, vector<1x1x16x128xf32>,
    %cst_22 = arith.constant 0.000000e+00 : f32
    %23 = vector.broadcast %cst_22 : f32 to vector<1x8x1x128xf32>
    %c0_23 = arith.constant 0 : index
    %c1 = arith.constant 1 : index
    %c0_24 = arith.constant 0 : index
    %c0_25 = arith.constant 0 : index
    %24 = vector.load %arg18[%c0_23, %c1, %c0_24, %c0_25] : memref<1x10x16x128xf32, #tpu.memory_space<vmem>>, vector<1x8x1x128xf32>
    tpu.vector_store %arg18[%c0_23, %c1, %c0_24, %c0_25], %23 {strides = array<i32>} : memref<1x10x16x128xf32, #tpu.memory_space<vmem>>, vector<1x8x1x128xf32>,
    %cst_26 = arith.constant 0.000000e+00 : f32
    %25 = vector.broadcast %cst_26 : f32 to vector<1x8x7x128xf32>
    %c0_27 = arith.constant 0 : index
    %c1_28 = arith.constant 1 : index
    %c9_29 = arith.constant 9 : index
    %c0_30 = arith.constant 0 : index
    %26 = vector.load %arg18[%c0_27, %c1_28, %c9_29, %c0_30] : memref<1x10x16x128xf32, #tpu.memory_space<vmem>>, vector<1x8x7x128xf32>
    tpu.vector_store %arg18[%c0_27, %c1_28, %c9_29, %c0_30], %25 {strides = array<i32>} : memref<1x10x16x128xf32, #tpu.memory_space<vmem>>, vector<1x8x7x128xf32>,
    %c0_31 = arith.constant 0 : index
    %c1_32 = arith.constant 1 : index
    %c1_33 = arith.constant 1 : index
    %c0_34 = arith.constant 0 : index
    %27 = vector.load %arg18[%c0_31, %c1_32, %c1_33, %c0_34] : memref<1x10x16x128xf32, #tpu.memory_space<vmem>>, vector<1x8x8x128xf32>
    tpu.vector_store %arg18[%c0_31, %c1_32, %c1_33, %c0_34], %18 {strides = array<i32>} : memref<1x10x16x128xf32, #tpu.memory_space<vmem>>, vector<1x8x8x128xf32>,
    %cst_35 = arith.constant 0.000000e+00 : f32
    %28 = vector.broadcast %cst_35 : f32 to vector<64x128xf32>
    %c0_36 = arith.constant 0 : index
    %c0_37 = arith.constant 0 : index
    %c0_38 = arith.constant 0 : index
    %c0_39 = arith.constant 0 : index
    %29 = vector.load %arg18[%c0_36, %c0_37, %c0_38, %c0_39] : memref<1x10x16x128xf32, #tpu.memory_space<vmem>>, vector<1x8x8x128xf32>
    %30 = vector.shape_cast %29 : vector<1x8x8x128xf32> to vector<64x128xf32>
    %31 = arith.truncf %30 : vector<64x128xf32> to vector<64x128xbf16>
    %c0_40 = arith.constant 0 : index
    %c0_41 = arith.constant 0 : index
    %c0_42 = arith.constant 0 : index
    %32 = vector.load %arg6[%c0_40, %c0_41, %c0_42] : memref<9x128x128xbf16, #tpu.memory_space<vmem>>, vector<1x128x128xbf16>
    %33 = vector.shape_cast %32 : vector<1x128x128xbf16> to vector<128x128xbf16>
    %cst_43 = arith.constant dense<0.000000e+00> : vector<64x128xf32>
    %34 = tpu.matmul %31, %33, %cst_43 {dimension_numbers = #tpu.dot_dimension_numbers<[1], [0], [0], [1], [0, 0, 1, 1], [], []>} : vector<64x128xbf16>, vector<128x128xbf16>, vector<64x128xf32> -> vector<64x128xf32>
    %35 = arith.addf %28, %34 : vector<64x128xf32>
    %c0_44 = arith.constant 0 : index
    %c0_45 = arith.constant 0 : index
    %c1_46 = arith.constant 1 : index
    %c0_47 = arith.constant 0 : index
    %36 = vector.load %arg18[%c0_44, %c0_45, %c1_46, %c0_47] : memref<1x10x16x128xf32, #tpu.memory_space<vmem>>, vector<1x8x8x128xf32>
    %37 = vector.shape_cast %36 : vector<1x8x8x128xf32> to vector<64x128xf32>
    %38 = arith.truncf %37 : vector<64x128xf32> to vector<64x128xbf16>
    %c1_48 = arith.constant 1 : index
    %c0_49 = arith.constant 0 : index
    %c0_50 = arith.constant 0 : index
    %39 = vector.load %arg6[%c1_48, %c0_49, %c0_50] : memref<9x128x128xbf16, #tpu.memory_space<vmem>>, vector<1x128x128xbf16>
    %40 = vector.shape_cast %39 : vector<1x128x128xbf16> to vector<128x128xbf16>
    %cst_51 = arith.constant dense<0.000000e+00> : vector<64x128xf32>
    %41 = tpu.matmul %38, %40, %cst_51 {dimension_numbers = #tpu.dot_dimension_numbers<[1], [0], [0], [1], [0, 0, 1, 1], [], []>} : vector<64x128xbf16>, vector<128x128xbf16>, vector<64x128xf32> -> vector<64x128xf32>
    %42 = arith.addf %35, %41 : vector<64x128xf32>
    %c0_52 = arith.constant 0 : index
    %c0_53 = arith.constant 0 : index
    %c2 = arith.constant 2 : index
    %c0_54 = arith.constant 0 : index
    %43 = vector.load %arg18[%c0_52, %c0_53, %c2, %c0_54] : memref<1x10x16x128xf32, #tpu.memory_space<vmem>>, vector<1x8x8x128xf32>
    %44 = vector.shape_cast %43 : vector<1x8x8x128xf32> to vector<64x128xf32>
    %45 = arith.truncf %44 : vector<64x128xf32> to vector<64x128xbf16>
    %c2_55 = arith.constant 2 : index
    %c0_56 = arith.constant 0 : index
    %c0_57 = arith.constant 0 : index
    %46 = vector.load %arg6[%c2_55, %c0_56, %c0_57] : memref<9x128x128xbf16, #tpu.memory_space<vmem>>, vector<1x128x128xbf16>
    %47 = vector.shape_cast %46 : vector<1x128x128xbf16> to vector<128x128xbf16>
    %cst_58 = arith.constant dense<0.000000e+00> : vector<64x128xf32>
    %48 = tpu.matmul %45, %47, %cst_58 {dimension_numbers = #tpu.dot_dimension_numbers<[1], [0], [0], [1], [0, 0, 1, 1], [], []>} : vector<64x128xbf16>, vector<128x128xbf16>, vector<64x128xf32> -> vector<64x128xf32>
    %49 = arith.addf %42, %48 : vector<64x128xf32>
    %c0_59 = arith.constant 0 : index
    %c1_60 = arith.constant 1 : index
    %c0_61 = arith.constant 0 : index
    %c0_62 = arith.constant 0 : index
    %50 = vector.load %arg18[%c0_59, %c1_60, %c0_61, %c0_62] : memref<1x10x16x128xf32, #tpu.memory_space<vmem>>, vector<1x8x8x128xf32>
    %51 = vector.shape_cast %50 : vector<1x8x8x128xf32> to vector<64x128xf32>
    %52 = arith.truncf %51 : vector<64x128xf32> to vector<64x128xbf16>
    %c3 = arith.constant 3 : index
    %c0_63 = arith.constant 0 : index
    %c0_64 = arith.constant 0 : index
    %53 = vector.load %arg6[%c3, %c0_63, %c0_64] : memref<9x128x128xbf16, #tpu.memory_space<vmem>>, vector<1x128x128xbf16>
    %54 = vector.shape_cast %53 : vector<1x128x128xbf16> to vector<128x128xbf16>
    %cst_65 = arith.constant dense<0.000000e+00> : vector<64x128xf32>
    %55 = tpu.matmul %52, %54, %cst_65 {dimension_numbers = #tpu.dot_dimension_numbers<[1], [0], [0], [1], [0, 0, 1, 1], [], []>} : vector<64x128xbf16>, vector<128x128xbf16>, vector<64x128xf32> -> vector<64x128xf32>
    %56 = arith.addf %49, %55 : vector<64x128xf32>
    %c0_66 = arith.constant 0 : index
    %c1_67 = arith.constant 1 : index
    %c1_68 = arith.constant 1 : index
    %c0_69 = arith.constant 0 : index
    %57 = vector.load %arg18[%c0_66, %c1_67, %c1_68, %c0_69] : memref<1x10x16x128xf32, #tpu.memory_space<vmem>>, vector<1x8x8x128xf32>
    %58 = vector.shape_cast %57 : vector<1x8x8x128xf32> to vector<64x128xf32>
    %59 = arith.truncf %58 : vector<64x128xf32> to vector<64x128xbf16>
    %c4 = arith.constant 4 : index
    %c0_70 = arith.constant 0 : index
    %c0_71 = arith.constant 0 : index
    %60 = vector.load %arg6[%c4, %c0_70, %c0_71] : memref<9x128x128xbf16, #tpu.memory_space<vmem>>, vector<1x128x128xbf16>
    %61 = vector.shape_cast %60 : vector<1x128x128xbf16> to vector<128x128xbf16>
    %cst_72 = arith.constant dense<0.000000e+00> : vector<64x128xf32>
    %62 = tpu.matmul %59, %61, %cst_72 {dimension_numbers = #tpu.dot_dimension_numbers<[1], [0], [0], [1], [0, 0, 1, 1], [], []>} : vector<64x128xbf16>, vector<128x128xbf16>, vector<64x128xf32> -> vector<64x128xf32>
    %63 = arith.addf %56, %62 : vector<64x128xf32>
    %c0_73 = arith.constant 0 : index
    %c1_74 = arith.constant 1 : index
    %c2_75 = arith.constant 2 : index
    %c0_76 = arith.constant 0 : index
    %64 = vector.load %arg18[%c0_73, %c1_74, %c2_75, %c0_76] : memref<1x10x16x128xf32, #tpu.memory_space<vmem>>, vector<1x8x8x128xf32>
    %65 = vector.shape_cast %64 : vector<1x8x8x128xf32> to vector<64x128xf32>
    %66 = arith.truncf %65 : vector<64x128xf32> to vector<64x128xbf16>
    %c5 = arith.constant 5 : index
    %c0_77 = arith.constant 0 : index
    %c0_78 = arith.constant 0 : index
    %67 = vector.load %arg6[%c5, %c0_77, %c0_78] : memref<9x128x128xbf16, #tpu.memory_space<vmem>>, vector<1x128x128xbf16>
    %68 = vector.shape_cast %67 : vector<1x128x128xbf16> to vector<128x128xbf16>
    %cst_79 = arith.constant dense<0.000000e+00> : vector<64x128xf32>
    %69 = tpu.matmul %66, %68, %cst_79 {dimension_numbers = #tpu.dot_dimension_numbers<[1], [0], [0], [1], [0, 0, 1, 1], [], []>} : vector<64x128xbf16>, vector<128x128xbf16>, vector<64x128xf32> -> vector<64x128xf32>
    %70 = arith.addf %63, %69 : vector<64x128xf32>
    %c0_80 = arith.constant 0 : index
    %c2_81 = arith.constant 2 : index
    %c0_82 = arith.constant 0 : index
    %c0_83 = arith.constant 0 : index
    %71 = vector.load %arg18[%c0_80, %c2_81, %c0_82, %c0_83] : memref<1x10x16x128xf32, #tpu.memory_space<vmem>>, vector<1x8x8x128xf32>
    %72 = vector.shape_cast %71 : vector<1x8x8x128xf32> to vector<64x128xf32>
    %73 = arith.truncf %72 : vector<64x128xf32> to vector<64x128xbf16>
    %c6 = arith.constant 6 : index
    %c0_84 = arith.constant 0 : index
    %c0_85 = arith.constant 0 : index
    %74 = vector.load %arg6[%c6, %c0_84, %c0_85] : memref<9x128x128xbf16, #tpu.memory_space<vmem>>, vector<1x128x128xbf16>
    %75 = vector.shape_cast %74 : vector<1x128x128xbf16> to vector<128x128xbf16>
    %cst_86 = arith.constant dense<0.000000e+00> : vector<64x128xf32>
    %76 = tpu.matmul %73, %75, %cst_86 {dimension_numbers = #tpu.dot_dimension_numbers<[1], [0], [0], [1], [0, 0, 1, 1], [], []>} : vector<64x128xbf16>, vector<128x128xbf16>, vector<64x128xf32> -> vector<64x128xf32>
    %77 = arith.addf %70, %76 : vector<64x128xf32>
    %c0_87 = arith.constant 0 : index
    %c2_88 = arith.constant 2 : index
    %c1_89 = arith.constant 1 : index
    %c0_90 = arith.constant 0 : index
    %78 = vector.load %arg18[%c0_87, %c2_88, %c1_89, %c0_90] : memref<1x10x16x128xf32, #tpu.memory_space<vmem>>, vector<1x8x8x128xf32>
    %79 = vector.shape_cast %78 : vector<1x8x8x128xf32> to vector<64x128xf32>
    %80 = arith.truncf %79 : vector<64x128xf32> to vector<64x128xbf16>
    %c7 = arith.constant 7 : index
    %c0_91 = arith.constant 0 : index
    %c0_92 = arith.constant 0 : index
    %81 = vector.load %arg6[%c7, %c0_91, %c0_92] : memref<9x128x128xbf16, #tpu.memory_space<vmem>>, vector<1x128x128xbf16>
    %82 = vector.shape_cast %81 : vector<1x128x128xbf16> to vector<128x128xbf16>
    %cst_93 = arith.constant dense<0.000000e+00> : vector<64x128xf32>
    %83 = tpu.matmul %80, %82, %cst_93 {dimension_numbers = #tpu.dot_dimension_numbers<[1], [0], [0], [1], [0, 0, 1, 1], [], []>} : vector<64x128xbf16>, vector<128x128xbf16>, vector<64x128xf32> -> vector<64x128xf32>
    %84 = arith.addf %77, %83 : vector<64x128xf32>
    %c0_94 = arith.constant 0 : index
    %c2_95 = arith.constant 2 : index
    %c2_96 = arith.constant 2 : index
    %c0_97 = arith.constant 0 : index
    %85 = vector.load %arg18[%c0_94, %c2_95, %c2_96, %c0_97] : memref<1x10x16x128xf32, #tpu.memory_space<vmem>>, vector<1x8x8x128xf32>
    %86 = vector.shape_cast %85 : vector<1x8x8x128xf32> to vector<64x128xf32>
    %87 = arith.truncf %86 : vector<64x128xf32> to vector<64x128xbf16>
    %c8 = arith.constant 8 : index
    %c0_98 = arith.constant 0 : index
    %c0_99 = arith.constant 0 : index
    %88 = vector.load %arg6[%c8, %c0_98, %c0_99] : memref<9x128x128xbf16, #tpu.memory_space<vmem>>, vector<1x128x128xbf16>
    %89 = vector.shape_cast %88 : vector<1x128x128xbf16> to vector<128x128xbf16>
    %cst_100 = arith.constant dense<0.000000e+00> : vector<64x128xf32>
    %90 = tpu.matmul %87, %89, %cst_100 {dimension_numbers = #tpu.dot_dimension_numbers<[1], [0], [0], [1], [0, 0, 1, 1], [], []>} : vector<64x128xbf16>, vector<128x128xbf16>, vector<64x128xf32> -> vector<64x128xf32>
    %91 = arith.addf %84, %90 : vector<64x128xf32>
    %c0_101 = arith.constant 0 : index
    %c0_102 = arith.constant 0 : index
    %92 = vector.load %arg7[%c0_101, %c0_102] : memref<1x128xf32, #tpu.memory_space<vmem>>, vector<1x128xf32>
    %93 = vector.broadcast %92 : vector<1x128xf32> to vector<64x128xf32>
    %94 = arith.addf %91, %93 : vector<64x128xf32>
    %95 = arith.truncf %94 : vector<64x128xf32> to vector<64x128xbf16>
    %c0_103 = arith.constant 0 : index
    %c0_104 = arith.constant 0 : index
    %96 = vector.load %arg8[%c0_103, %c0_104] : memref<128x128xbf16, #tpu.memory_space<vmem>>, vector<128x128xbf16>
    %cst_105 = arith.constant dense<0.000000e+00> : vector<64x128xf32>
    %97 = tpu.matmul %95, %96, %cst_105 {dimension_numbers = #tpu.dot_dimension_numbers<[1], [0], [0], [1], [0, 0, 1, 1], [], []>} : vector<64x128xbf16>, vector<128x128xbf16>, vector<64x128xf32> -> vector<64x128xf32>
    %c0_106 = arith.constant 0 : index
    %c0_107 = arith.constant 0 : index
    %98 = vector.load %arg9[%c0_106, %c0_107] : memref<1x128xf32, #tpu.memory_space<vmem>>, vector<1x128xf32>
    %99 = vector.broadcast %98 : vector<1x128xf32> to vector<64x128xf32>
    %100 = arith.addf %97, %99 : vector<64x128xf32>
    %cst_108 = arith.constant 0.00999999977 : f32
    %101 = vector.broadcast %cst_108 : f32 to vector<64x128xf32>
    %102 = arith.mulf %101, %100 : vector<64x128xf32>
    %103 = arith.maximumf %100, %102 : vector<64x128xf32>
    %104 = vector.shape_cast %103 : vector<64x128xf32> to vector<1x8x8x128xf32>
    %c0_109 = arith.constant 0 : index
    %c1_110 = arith.constant 1 : index
    %c1_111 = arith.constant 1 : index
    %c0_112 = arith.constant 0 : index
    %105 = vector.load %arg18[%c0_109, %c1_110, %c1_111, %c0_112] : memref<1x10x16x128xf32, #tpu.memory_space<vmem>>, vector<1x8x8x128xf32>
    tpu.vector_store %arg18[%c0_109, %c1_110, %c1_111, %c0_112], %104 {strides = array<i32>} : memref<1x10x16x128xf32, #tpu.memory_space<vmem>>, vector<1x8x8x128xf32>,
    %cst_113 = arith.constant 0.000000e+00 : f32
    %106 = vector.broadcast %cst_113 : f32 to vector<1x8x8x128xf32>
    %c0_114 = arith.constant 0 : index
    %c0_115 = arith.constant 0 : index
    %c0_116 = arith.constant 0 : index
    %c0_117 = arith.constant 0 : index
    %107 = vector.load %arg18[%c0_114, %c0_115, %c0_116, %c0_117] : memref<1x10x16x128xf32, #tpu.memory_space<vmem>>, vector<1x8x8x128xf32>
    %c0_118 = arith.constant 0 : index
    %c0_119 = arith.constant 0 : index
    %108 = vector.load %arg10[%c0_118, %c0_119] : memref<9x128xf32, #tpu.memory_space<vmem>>, vector<1x128xf32>
    %109 = vector.shape_cast %108 : vector<1x128xf32> to vector<1x1x1x128xf32>
    %110 = vector.broadcast %109 : vector<1x1x1x128xf32> to vector<1x8x8x128xf32>
    %111 = arith.mulf %107, %110 : vector<1x8x8x128xf32>
    %112 = arith.addf %106, %111 : vector<1x8x8x128xf32>
    %c0_120 = arith.constant 0 : index
    %c0_121 = arith.constant 0 : index
    %c1_122 = arith.constant 1 : index
    %c0_123 = arith.constant 0 : index
    %113 = vector.load %arg18[%c0_120, %c0_121, %c1_122, %c0_123] : memref<1x10x16x128xf32, #tpu.memory_space<vmem>>, vector<1x8x8x128xf32>
    %c1_124 = arith.constant 1 : index
    %c0_125 = arith.constant 0 : index
    %114 = vector.load %arg10[%c1_124, %c0_125] : memref<9x128xf32, #tpu.memory_space<vmem>>, vector<1x128xf32>
    %115 = vector.shape_cast %114 : vector<1x128xf32> to vector<1x1x1x128xf32>
    %116 = vector.broadcast %115 : vector<1x1x1x128xf32> to vector<1x8x8x128xf32>
    %117 = arith.mulf %113, %116 : vector<1x8x8x128xf32>
    %118 = arith.addf %112, %117 : vector<1x8x8x128xf32>
    %c0_126 = arith.constant 0 : index
    %c0_127 = arith.constant 0 : index
    %c2_128 = arith.constant 2 : index
    %c0_129 = arith.constant 0 : index
    %119 = vector.load %arg18[%c0_126, %c0_127, %c2_128, %c0_129] : memref<1x10x16x128xf32, #tpu.memory_space<vmem>>, vector<1x8x8x128xf32>
    %c2_130 = arith.constant 2 : index
    %c0_131 = arith.constant 0 : index
    %120 = vector.load %arg10[%c2_130, %c0_131] : memref<9x128xf32, #tpu.memory_space<vmem>>, vector<1x128xf32>
    %121 = vector.shape_cast %120 : vector<1x128xf32> to vector<1x1x1x128xf32>
    %122 = vector.broadcast %121 : vector<1x1x1x128xf32> to vector<1x8x8x128xf32>
    %123 = arith.mulf %119, %122 : vector<1x8x8x128xf32>
    %124 = arith.addf %118, %123 : vector<1x8x8x128xf32>
    %c0_132 = arith.constant 0 : index
    %c1_133 = arith.constant 1 : index
    %c0_134 = arith.constant 0 : index
    %c0_135 = arith.constant 0 : index
    %125 = vector.load %arg18[%c0_132, %c1_133, %c0_134, %c0_135] : memref<1x10x16x128xf32, #tpu.memory_space<vmem>>, vector<1x8x8x128xf32>
    %c3_136 = arith.constant 3 : index
    %c0_137 = arith.constant 0 : index
    %126 = vector.load %arg10[%c3_136, %c0_137] : memref<9x128xf32, #tpu.memory_space<vmem>>, vector<1x128xf32>
    %127 = vector.shape_cast %126 : vector<1x128xf32> to vector<1x1x1x128xf32>
    %128 = vector.broadcast %127 : vector<1x1x1x128xf32> to vector<1x8x8x128xf32>
    %129 = arith.mulf %125, %128 : vector<1x8x8x128xf32>
    %130 = arith.addf %124, %129 : vector<1x8x8x128xf32>
    %c0_138 = arith.constant 0 : index
    %c1_139 = arith.constant 1 : index
    %c1_140 = arith.constant 1 : index
    %c0_141 = arith.constant 0 : index
    %131 = vector.load %arg18[%c0_138, %c1_139, %c1_140, %c0_141] : memref<1x10x16x128xf32, #tpu.memory_space<vmem>>, vector<1x8x8x128xf32>
    %c4_142 = arith.constant 4 : index
    %c0_143 = arith.constant 0 : index
    %132 = vector.load %arg10[%c4_142, %c0_143] : memref<9x128xf32, #tpu.memory_space<vmem>>, vector<1x128xf32>
    %133 = vector.shape_cast %132 : vector<1x128xf32> to vector<1x1x1x128xf32>
    %134 = vector.broadcast %133 : vector<1x1x1x128xf32> to vector<1x8x8x128xf32>
    %135 = arith.mulf %131, %134 : vector<1x8x8x128xf32>
    %136 = arith.addf %130, %135 : vector<1x8x8x128xf32>
    %c0_144 = arith.constant 0 : index
    %c1_145 = arith.constant 1 : index
    %c2_146 = arith.constant 2 : index
    %c0_147 = arith.constant 0 : index
    %137 = vector.load %arg18[%c0_144, %c1_145, %c2_146, %c0_147] : memref<1x10x16x128xf32, #tpu.memory_space<vmem>>, vector<1x8x8x128xf32>
    %c5_148 = arith.constant 5 : index
    %c0_149 = arith.constant 0 : index
    %138 = vector.load %arg10[%c5_148, %c0_149] : memref<9x128xf32, #tpu.memory_space<vmem>>, vector<1x128xf32>
    %139 = vector.shape_cast %138 : vector<1x128xf32> to vector<1x1x1x128xf32>
    %140 = vector.broadcast %139 : vector<1x1x1x128xf32> to vector<1x8x8x128xf32>
    %141 = arith.mulf %137, %140 : vector<1x8x8x128xf32>
    %142 = arith.addf %136, %141 : vector<1x8x8x128xf32>
    %c0_150 = arith.constant 0 : index
    %c2_151 = arith.constant 2 : index
    %c0_152 = arith.constant 0 : index
    %c0_153 = arith.constant 0 : index
    %143 = vector.load %arg18[%c0_150, %c2_151, %c0_152, %c0_153] : memref<1x10x16x128xf32, #tpu.memory_space<vmem>>, vector<1x8x8x128xf32>
    %c6_154 = arith.constant 6 : index
    %c0_155 = arith.constant 0 : index
    %144 = vector.load %arg10[%c6_154, %c0_155] : memref<9x128xf32, #tpu.memory_space<vmem>>, vector<1x128xf32>
    %145 = vector.shape_cast %144 : vector<1x128xf32> to vector<1x1x1x128xf32>
    %146 = vector.broadcast %145 : vector<1x1x1x128xf32> to vector<1x8x8x128xf32>
    %147 = arith.mulf %143, %146 : vector<1x8x8x128xf32>
    %148 = arith.addf %142, %147 : vector<1x8x8x128xf32>
    %c0_156 = arith.constant 0 : index
    %c2_157 = arith.constant 2 : index
    %c1_158 = arith.constant 1 : index
    %c0_159 = arith.constant 0 : index
    %149 = vector.load %arg18[%c0_156, %c2_157, %c1_158, %c0_159] : memref<1x10x16x128xf32, #tpu.memory_space<vmem>>, vector<1x8x8x128xf32>
    %c7_160 = arith.constant 7 : index
    %c0_161 = arith.constant 0 : index
    %150 = vector.load %arg10[%c7_160, %c0_161] : memref<9x128xf32, #tpu.memory_space<vmem>>, vector<1x128xf32>
    %151 = vector.shape_cast %150 : vector<1x128xf32> to vector<1x1x1x128xf32>
    %152 = vector.broadcast %151 : vector<1x1x1x128xf32> to vector<1x8x8x128xf32>
    %153 = arith.mulf %149, %152 : vector<1x8x8x128xf32>
    %154 = arith.addf %148, %153 : vector<1x8x8x128xf32>
    %c0_162 = arith.constant 0 : index
    %c2_163 = arith.constant 2 : index
    %c2_164 = arith.constant 2 : index
    %c0_165 = arith.constant 0 : index
    %155 = vector.load %arg18[%c0_162, %c2_163, %c2_164, %c0_165] : memref<1x10x16x128xf32, #tpu.memory_space<vmem>>, vector<1x8x8x128xf32>
    %c8_166 = arith.constant 8 : index
    %c0_167 = arith.constant 0 : index
    %156 = vector.load %arg10[%c8_166, %c0_167] : memref<9x128xf32, #tpu.memory_space<vmem>>, vector<1x128xf32>
    %157 = vector.shape_cast %156 : vector<1x128xf32> to vector<1x1x1x128xf32>
    %158 = vector.broadcast %157 : vector<1x1x1x128xf32> to vector<1x8x8x128xf32>
    %159 = arith.mulf %155, %158 : vector<1x8x8x128xf32>
    %160 = arith.addf %154, %159 : vector<1x8x8x128xf32>
    %c0_168 = arith.constant 0 : index
    %c0_169 = arith.constant 0 : index
    %161 = vector.load %arg11[%c0_168, %c0_169] : memref<1x128xf32, #tpu.memory_space<vmem>>, vector<1x128xf32>
    %162 = vector.shape_cast %161 : vector<1x128xf32> to vector<1x1x1x128xf32>
    %163 = vector.broadcast %162 : vector<1x1x1x128xf32> to vector<1x8x8x128xf32>
    %164 = arith.addf %160, %163 : vector<1x8x8x128xf32>
    %165 = vector.shape_cast %164 : vector<1x8x8x128xf32> to vector<64x128xf32>
    %cst_170 = arith.constant 0.000000e+00 : f32
    %166 = vector.broadcast %cst_170 : f32 to vector<64x128xf32>
    %167 = arith.maximumf %165, %166 : vector<64x128xf32>
    %168 = vector.shape_cast %167 : vector<64x128xf32> to vector<1x64x128xf32>
    %cst_171 = arith.constant dense<0.000000e+00> : vector<1x128xf32>
    %169 = vector.multi_reduction <add>, %168, %cst_171 [1] : vector<1x64x128xf32> to vector<1x128xf32>
    %cst_172 = arith.constant 1.562500e-02 : f32
    %170 = vector.broadcast %cst_172 : f32 to vector<1x128xf32>
    %171 = arith.mulf %169, %170 : vector<1x128xf32>
    %172 = arith.truncf %171 : vector<1x128xf32> to vector<1x128xbf16>
    %c0_173 = arith.constant 0 : index
    %c0_174 = arith.constant 0 : index
    %173 = vector.load %arg12[%c0_173, %c0_174] : memref<128x128xbf16, #tpu.memory_space<vmem>>, vector<128x128xbf16>
    %cst_175 = arith.constant dense<0.000000e+00> : vector<1x128xf32>
    %174 = tpu.matmul %172, %173, %cst_175 {dimension_numbers = #tpu.dot_dimension_numbers<[1], [0], [0], [1], [0, 0, 1, 1], [], []>} : vector<1x128xbf16>, vector<128x128xbf16>, vector<1x128xf32> -> vector<1x128xf32>
    %c0_176 = arith.constant 0 : index
    %c0_177 = arith.constant 0 : index
    %175 = vector.load %arg13[%c0_176, %c0_177] : memref<1x128xf32, #tpu.memory_space<vmem>>, vector<1x128xf32>
    %176 = arith.addf %174, %175 : vector<1x128xf32>
    %177 = vector.shape_cast %176 : vector<1x128xf32> to vector<1x1x128xf32>
    %c0_178 = arith.constant 0 : index
    %c0_179 = arith.constant 0 : index
    %c0_180 = arith.constant 0 : index
    %178 = vector.load %arg16[%c0_178, %c0_179, %c0_180] : memref<1x1x128xf32, #tpu.memory_space<vmem>>, vector<1x1x128xf32>
    tpu.vector_store %arg16[%c0_178, %c0_179, %c0_180], %177 {strides = array<i32>} : memref<1x1x128xf32, #tpu.memory_space<vmem>>, vector<1x1x128xf32>,
    %179 = arith.truncf %176 : vector<1x128xf32> to vector<1x128xbf16>
    %c0_181 = arith.constant 0 : index
    %c0_182 = arith.constant 0 : index
    %180 = vector.load %arg14[%c0_181, %c0_182] : memref<128x128xbf16, #tpu.memory_space<vmem>>, vector<128x128xbf16>
    %cst_183 = arith.constant dense<0.000000e+00> : vector<1x128xf32>
    %181 = tpu.matmul %179, %180, %cst_183 {dimension_numbers = #tpu.dot_dimension_numbers<[1], [0], [0], [1], [0, 0, 1, 1], [], []>} : vector<1x128xbf16>, vector<128x128xbf16>, vector<1x128xf32> -> vector<1x128xf32>
    %c0_184 = arith.constant 0 : index
    %c0_185 = arith.constant 0 : index
    %182 = vector.load %arg15[%c0_184, %c0_185] : memref<1x128xf32, #tpu.memory_space<vmem>>, vector<1x128xf32>
    %183 = arith.addf %181, %182 : vector<1x128xf32>
    %184 = vector.shape_cast %183 : vector<1x128xf32> to vector<1x1x128xf32>
    %c0_186 = arith.constant 0 : index
    %c0_187 = arith.constant 0 : index
    %c0_188 = arith.constant 0 : index
    %185 = vector.load %arg17[%c0_186, %c0_187, %c0_188] : memref<1x1x128xf32, #tpu.memory_space<vmem>>, vector<1x1x128xf32>
    tpu.vector_store %arg17[%c0_186, %c0_187, %c0_188], %184 {strides = array<i32>} : memref<1x1x128xf32, #tpu.memory_space<vmem>>, vector<1x1x128xf32>,
    return
  }
  func.func @transform_0(%arg0: i32) -> (i32, i32, i32, i32) {
    %c0_i32 = arith.constant 0 : i32
    %c0_i32_0 = arith.constant 0 : i32
    %c0_i32_1 = arith.constant 0 : i32
    %c0_i32_2 = arith.constant 0 : i32
    return %arg0, %c0_i32, %c0_i32_0, %c0_i32_1 : i32, i32, i32, i32
  }
  func.func @transform_1(%arg0: i32) -> (i32, i32) {
    %c0_i32 = arith.constant 0 : i32
    %c0_i32_0 = arith.constant 0 : i32
    %c0_i32_1 = arith.constant 0 : i32
    return %c0_i32, %c0_i32_0 : i32, i32
  }
  func.func @transform_2(%arg0: i32) -> (i32, i32) {
    %c0_i32 = arith.constant 0 : i32
    %c0_i32_0 = arith.constant 0 : i32
    %c0_i32_1 = arith.constant 0 : i32
    return %c0_i32, %c0_i32_0 : i32, i32
  }
  func.func @transform_3(%arg0: i32) -> (i32, i32) {
    %c0_i32 = arith.constant 0 : i32
    %c0_i32_0 = arith.constant 0 : i32
    %c0_i32_1 = arith.constant 0 : i32
    return %c0_i32, %c0_i32_0 : i32, i32
  }
  func.func @transform_4(%arg0: i32) -> (i32, i32) {
    %c0_i32 = arith.constant 0 : i32
    %c0_i32_0 = arith.constant 0 : i32
    %c0_i32_1 = arith.constant 0 : i32
    return %c0_i32, %c0_i32_0 : i32, i32
  }
  func.func @transform_5(%arg0: i32) -> (i32, i32, i32) {
    %c0_i32 = arith.constant 0 : i32
    %c0_i32_0 = arith.constant 0 : i32
    %c0_i32_1 = arith.constant 0 : i32
    %c0_i32_2 = arith.constant 0 : i32
    return %c0_i32, %c0_i32_0, %c0_i32_1 : i32, i32, i32
  }
  func.func @transform_6(%arg0: i32) -> (i32, i32) {
    %c0_i32 = arith.constant 0 : i32
    %c0_i32_0 = arith.constant 0 : i32
    %c0_i32_1 = arith.constant 0 : i32
    return %c0_i32, %c0_i32_0 : i32, i32
  }
  func.func @transform_7(%arg0: i32) -> (i32, i32) {
    %c0_i32 = arith.constant 0 : i32
    %c0_i32_0 = arith.constant 0 : i32
    %c0_i32_1 = arith.constant 0 : i32
    return %c0_i32, %c0_i32_0 : i32, i32
  }
  func.func @transform_8(%arg0: i32) -> (i32, i32) {
    %c0_i32 = arith.constant 0 : i32
    %c0_i32_0 = arith.constant 0 : i32
    %c0_i32_1 = arith.constant 0 : i32
    return %c0_i32, %c0_i32_0 : i32, i32
  }
  func.func @transform_9(%arg0: i32) -> (i32, i32) {
    %c0_i32 = arith.constant 0 : i32
    %c0_i32_0 = arith.constant 0 : i32
    %c0_i32_1 = arith.constant 0 : i32
    return %c0_i32, %c0_i32_0 : i32, i32
  }
  func.func @transform_10(%arg0: i32) -> (i32, i32) {
    %c0_i32 = arith.constant 0 : i32
    %c0_i32_0 = arith.constant 0 : i32
    %c0_i32_1 = arith.constant 0 : i32
    return %c0_i32, %c0_i32_0 : i32, i32
  }
  func.func @transform_11(%arg0: i32) -> (i32, i32) {
    %c0_i32 = arith.constant 0 : i32
    %c0_i32_0 = arith.constant 0 : i32
    %c0_i32_1 = arith.constant 0 : i32
    return %c0_i32, %c0_i32_0 : i32, i32
  }
  func.func @transform_12(%arg0: i32) -> (i32, i32) {
    %c0_i32 = arith.constant 0 : i32
    %c0_i32_0 = arith.constant 0 : i32
    %c0_i32_1 = arith.constant 0 : i32
    return %c0_i32, %c0_i32_0 : i32, i32
  }
  func.func @transform_13(%arg0: i32) -> (i32, i32) {
    %c0_i32 = arith.constant 0 : i32
    %c0_i32_0 = arith.constant 0 : i32
    %c0_i32_1 = arith.constant 0 : i32
    return %c0_i32, %c0_i32_0 : i32, i32
  }
  func.func @transform_14(%arg0: i32) -> (i32, i32) {
    %c0_i32 = arith.constant 0 : i32
    %c0_i32_0 = arith.constant 0 : i32
    %c0_i32_1 = arith.constant 0 : i32
    return %c0_i32, %c0_i32_0 : i32, i32
  }
  func.func @transform_15(%arg0: i32) -> (i32, i32, i32) {
    %c0_i32 = arith.constant 0 : i32
    %c0_i32_0 = arith.constant 0 : i32
    %c0_i32_1 = arith.constant 0 : i32
    return %arg0, %c0_i32, %c0_i32_0 : i32, i32, i32
  }
  func.func @transform_16(%arg0: i32) -> (i32, i32, i32) {
    %c0_i32 = arith.constant 0 : i32
    %c0_i32_0 = arith.constant 0 : i32
    %c0_i32_1 = arith.constant 0 : i32
    return %arg0, %c0_i32, %c0_i32_0 : i32, i32, i32
  }
}

</mosaic_0001>

<bundles_post_ra>
// kernel: extractor_forward.1
= control target key start
LH: loop header
LB: loop body
LE: loop exit
PB: predicated region body
PF: predicated region fallthrough
CT: control target
= control target key end

     0   :  { %s4287_s0 = inlined_call_operand.vmem [shape: bf16[2,8,8,128], index: 0, kind: input, shape index: {}]   ;;  %s4288_s1 = inlined_call_operand.vmem [shape: bf16[128,128], index: 1, kind: input, shape index: {}]   ;;  %s4289_s2 = inlined_call_operand.vmem [shape: f32[1,128], index: 2, kind: input, shape index: {}]   ;;  %s4290_s3 = inlined_call_operand.vmem [shape: f32[1,128], index: 3, kind: input, shape index: {}]   ;;  %s4291_s4 = inlined_call_operand.hbm [shape: f32[1,128], index: 4, kind: input, shape index: {}]   ;;  %s4292_s5 = inlined_call_operand.hbm [shape: bf16[9,128,128], index: 5, kind: input, shape index: {}]   ;;  %s4293_s6 = inlined_call_operand.vmem [shape: f32[1,128], index: 6, kind: input, shape index: {}]   ;;  %s4294_s7 = inlined_call_operand.vmem [shape: bf16[128,128], index: 7, kind: input, shape index: {}]   ;;  %s4295_s8 = inlined_call_operand.vmem [shape: f32[1,128], index: 8, kind: input, shape index: {}]   ;;  %s4296_s9 = inlined_call_operand.hbm [shape: f32[9,128], index: 9, kind: input, shape index: {}]   ;;  %s4297_s10 = inlined_call_operand.vmem [shape: f32[1,128], index: 10, kind: input, shape index: {}]   ;;  %s4298_s11 = inlined_call_operand.vmem [shape: bf16[128,128], index: 11, kind: input, shape index: {}]   ;;  %s4299_s12 = inlined_call_operand.hbm [shape: f32[1,128], index: 12, kind: input, shape index: {}]   ;;  %s4300_s13 = inlined_call_operand.hbm [shape: bf16[128,128], index: 13, kind: input, shape index: {}]   ;;  %s4301_s14 = inlined_call_operand.hbm [shape: f32[1,128], index: 14, kind: input, shape index: {}]   ;;  %s4302_s15 = inlined_call_operand.hbm [shape: f32[2,1,128], index: 15, kind: output, shape index: {0}]   ;;  %s4303_s16 = inlined_call_operand.hbm [shape: f32[2,1,128], index: 16, kind: output, shape index: {1}]  }
   0x1   :  { %4315 = sst [smem:[#allocation30_spill]] %s4287_s0 }
   0x2   :  { %4316 = sst [smem:[#allocation31_spill]] %s4292_s5 }
   0x3   :  { %4317 = sst [smem:[#allocation32_spill]] %s4299_s12 }
   0x4   :  { %4318 = sst [smem:[#allocation33_spill]] %s4302_s15 }
   0x5   :  { %4319 = sst [smem:[#allocation34_spill]] %s4303_s16 }
   0x6   :  { %22 = vsyncpa [#allocation4], 0 }
   0x7   :  { %23 = vsyncpa [#allocation7], 0 }
   0x8   :  { %24 = vsyncpa [#allocation10], 0 }
   0x9   :  { %25 = vsyncpa [#allocation13], 0 }
   0xa   :  { %26 = vsyncpa [#allocation5], 0 }
   0xb   :  { %28 = vsyncpa [#allocation5 + $0x1], 0 }
   0xc   :  { %29 = vsyncpa [#allocation16], 0 }
   0xd   :  { %31 = vsyncpa [#allocation16 + $0x1], 0  ;;  %s3653_s21 = smov 0   ;;  %s3655_s22 = smov 0  }
   0xe   :  { %s3657_s23 = smov 0   ;;  %s3659_s24 = smov 0  }
   0xf LB: > { %4320 = sst [smem:[#allocation23_spill]] %s3543_s21  ;;  %s3674_s25 = sadd.s32 4294967295, %s3555_s24   ;;  %s3555_s24 = sphi %s3659_s24, %s4341_s24   ;;  %s3551_s23 = sphi %s3657_s23, %s4343_s23   ;;  %s3547_s22 = sphi %s3655_s22, %s4345_s22   ;;  %s3543_s21 = sphi %s3653_s21, %s4344_s21  }
  0x10   : > { %4321 = sst [smem:[#allocation24_spill]] %s3551_s23  ;;  %s2578_s26 = sadd.s32 4294967294, %s3555_s24  }
  0x11   : > { %4322 = sst [smem:[#allocation25_spill]] %s3555_s24  ;;  %s3678_s27 = sadd.s32 1, %s3555_s24  }
  0x12   : > { %4323 = sst [smem:[#allocation26_spill]] %s3678_s27  ;;  %s364_s28 = sadd.s32 1, %s3551_s23 }
  0x13   : > { %s361_s29 = ssub.s32 %s3555_s24, %s3678_s27  ;;  %p374_p0 = scmp.ne.s32.totalorder %s3551_s23, %s3547_s22 }
  0x14   : > { %p362_p1 = scmp.eq.s32.totalorder %s361_s29, 0  ;;  %p375_p2 = scmp.eq.s32.totalorder %s3674_s25, 1 }
  0x15   : > { %p380_p3 = scmp.ne.s32.totalorder %s3547_s22, %s3543_s21  ;;  %p381_p4 = scmp.eq.s32.totalorder %s2578_s26, 1 }
  0x16   : > { %s3689_s30 = scalar_select %p362_p1, %s3551_s23, %s364_s28  }
  0x17   : > { %p3691_p5 = por %p375_p2, %p374_p0  ;;  %p3695_p6 = por %p381_p4, %p380_p3 }
  0x18   : > { %4324 = sst [smem:[#allocation27_spill]] %s3689_s30  ;;  %p2579_p7 = scmp.ge.s32.totalorder %s3555_s24, 1 }
  0x19   : > { %s4325_s0 = scalar_select %p3691_p5, 1, 0 }
  0x1a   : > { %s4327_s17 = scalar_select %p3695_p6, 1, 0 }
  0x1b   : > { %4326 = sst [smem:[#allocation28_spill]] %s4325_s0  ;;  %p414_p8 = scmp.lt.s32.totalorder %s3555_s24, 3 }
  0x1c   : > { %4328 = sst [smem:[#allocation29_spill]] %s4327_s17  ;;  %p3193_p9 = scmp.eq.s32.totalorder %s3674_s25, 0 }
  0x1d   : > { %p3702_p10 = pnand %p2579_p7, %p414_p8  ;;  %s4330_s5 = sld [smem:[#allocation31_spill]] }
  0x1e   : > { %s3557_s28 = smov [#allocation6]   ;;  %s4332_s12 = sld [smem:[#allocation32_spill]] }
  0x1f   : > { %p3167_p11 = pneg %p3702_p10  ;;  %s448_s29 = sshll.u32 %s3557_s28, 4  ;;  %s449_s29 = int_to_ptr.vmem [resolvable:$true] %s448_s29 }
  0x20   : > { %s4314_s19 = smov 64   ;;  %s3559_s20 = smov 4  }
  0x21   : > { %p3713_p12 = pnand %p3193_p9, %p3167_p11  ;;  %s3560_s28 = smov [#allocation9]  }
  0x22   : > { %s435_s16 = sshll.u32 %s4291_s4, 4  ;;  %s3561_s15 = smov [#allocation3]   ;;  %s436_s16 = int_to_ptr.hbm [resolvable:$true] %s435_s16 }
  0x23   : > { %s446_s26 = sshll.u32 %s4330_s5, 4  ;;  %s492_s5 = sshll.u32 %s3560_s28, 4  ;;  %s447_s26 = int_to_ptr.hbm [resolvable:$true] %s446_s26  ;;  %s493_s5 = int_to_ptr.vmem [resolvable:$true] %s492_s5 }
  0x24   : > { %s490_s17 = sshll.u32 %s4332_s12, 4  ;;  %s469_s12 = sshll.u32 %s4296_s9, 4  ;;  %s491_s17 = int_to_ptr.hbm [resolvable:$true] %s490_s17  ;;  %s470_s12 = int_to_ptr.hbm [resolvable:$true] %s469_s12 }
  0x25   : > { %3173 = dma.hbm_to_vmem [thread:$0]  (!%p3713_p12), %s447_s26, 9216, %s449_s29, [#allocation7], %s4314_s19, %s4314_s19, %s3559_s20  }
  0x26   : > { %3179 = dma.hbm_to_vmem [thread:$0]  (!%p3713_p12), %s491_s17, 16, %s493_s5, [#allocation10]  }
  0x27   : > { %s437_s0 = sshll.u32 %s3561_s15, 4  ;;  %s3562_s26 = smov [#allocation8]   ;;  %s438_s0 = int_to_ptr.vmem [resolvable:$true] %s437_s0 }
  0x28   : > { %3170 = dma.hbm_to_vmem [thread:$0]  (!%p3713_p12), %s436_s16, 16, %s438_s0, [#allocation4]  }
  0x29   : > { %s471_s29 = sshll.u32 %s3562_s26, 4  ;;  %s3563_s21 = smov 128   ;;  %s472_s29 = int_to_ptr.vmem [resolvable:$true] %s471_s29 }
  0x2a   : > { %s3564_s24 = smov 8   ;;  %s501_s28 = sshll.u32 %s4300_s13, 4  ;;  %s502_s28 = int_to_ptr.hbm [resolvable:$true] %s501_s28 }
  0x2b   : > { %3176 = dma.hbm_to_vmem [thread:$0]  (!%p3713_p12), %s470_s12, 256, %s472_s29, [#allocation7], %s3563_s21, %s3563_s21, %s3564_s24  }
  0x2c   : > { %s3565_s23 = smov [#allocation11]   ;;  %s516_s16 = sshll.u32 %s4301_s14, 4  ;;  %s517_s16 = int_to_ptr.hbm [resolvable:$true] %s516_s16 }
  0x2d   : > { %s503_s15 = sshll.u32 %s3565_s23, 4  ;;  %s4333_s0 = smov 64   ;;  %s504_s15 = int_to_ptr.vmem [resolvable:$true] %s503_s15 }
  0x2e   : > { %3182 = dma.hbm_to_vmem [thread:$0]  (!%p3713_p12), %s502_s28, 1024, %s504_s15, [#allocation10], %s4333_s0, %s4333_s0, %s3559_s20  }
  0x2f   : > { %s3566_s26 = smov [#allocation12]   ;;  %539 = sbr.rel (%p3702_p10) target bundleno = 1013 (0x3f5), region = 80 }
  0x30   : > { %s518_s12 = sshll.u32 %s3566_s26, 4  ;;  %s519_s12 = int_to_ptr.vmem [resolvable:$true] %s518_s12 }
  0x31   : > { %3185 = dma.hbm_to_vmem [thread:$0]  (!%p3713_p12), %s517_s16, 16, %s519_s12, [#allocation13]  }
  0x34   : > { %3518 = dma.done.wait (%p3193_p9), [#allocation4], 16  }
  0x35   : > { %3520 = vsyncadd (%p3193_p9), [#allocation4], 4294967280 }
  0x36   : > { %3522 = dma.done.wait (%p3193_p9), [#allocation7], 9472  }
  0x37   : > { %3524 = vsyncadd (%p3193_p9), [#allocation7], 4294957824 }
  0x38   : > { %3526 = dma.done.wait (%p3193_p9), [#allocation10], 1040  }
  0x39   : > { %3528 = vsyncadd (%p3193_p9), [#allocation10], 4294966256 }
  0x3a   : > { %3530 = dma.done.wait (%p3193_p9), [#allocation13], 16  }
  0x3b   : > { %3532 = vsyncadd (%p3193_p9), [#allocation13], 4294967280  ;;  %v3042_v0 = vld [vmem:[%s4288_s1 + $0x38] sm:$0xff]  ;;  %v3041_v1 = vld [vmem:[%s4288_s1 + $0x30] sm:$0xff]  ;;  %p618_p13 = scmp.lt.s32.totalorder %s3674_s25, 1  ;;  %s4334_s20 = sld [smem:[#allocation30_spill]] }
  0x3c   : > { %723 = vmatpush.bf16.msra.mxu0 %v3042_v0  ;;  %v3040_v2 = vld [vmem:[%s4288_s1 + $0x28] sm:$0xff]  ;;  %v3039_v3 = vld [vmem:[%s4288_s1 + $0x20] sm:$0xff]  ;;  %v3038_v4 = vld [vmem:[%s4288_s1 + $0x18] sm:$0xff]  ;;  %v3567_v28 = vmov 0.0   ;;  %s4236_s16 = sand.u32 1, %s3547_s22   ;;  %s4336_s18 = sld [smem:[#allocation33_spill]] }
  0x3d   : > { %v3037_v5 = vld [vmem:[%s4288_s1 + $0x10] sm:$0xff]  ;;  %s619_s27 = scalar_select %p618_p13, %s3674_s25, 1  ;;  %v3036_v6 = vld [vmem:[%s4288_s1 + $0x8] sm:$0xff]  ;;  %v3035_v7 = vld [vmem:[%s4288_s1] sm:$0xff]  ;;  %800 = vst [vmem:[#allocation2] sm:$0xff] %v3567_v28 }
  0x3e   : > { %v3058_v10 = vld [vmem:[#allocation6 + $0x78] sm:$0xff]  ;;  %v3057_v13 = vld [vmem:[#allocation6 + $0x70] sm:$0xff]  ;;  %v3056_v18 = vld [vmem:[#allocation6 + $0x68] sm:$0xff]  ;;  %801 = vst [vmem:[#allocation2 + $0x8] sm:$0xff] %v3567_v28  ;;  %s2406_s21 = scalar_lea.sflag [#allocation5], %s4236_s16 }
  0x3f   : > { %s3030_s26 = sshll.u32 %s619_s27, 5  ;;  %v3050_v11 = vld [vmem:[#allocation6 + $0x38] sm:$0xff]  ;;  %935 = vmatpush.bf16.msra.mxu1 %v3058_v10  ;;  %v3049_v14 = vld [vmem:[#allocation6 + $0x30] sm:$0xff]  ;;  %v3055_v19 = vld [vmem:[#allocation6 + $0x60] sm:$0xff]  ;;  %803 = vst [vmem:[#allocation2 + $0x90] sm:$0xff] %v3567_v28 }
  0x40   : > { %724 = vmatpush.bf16.msra.mxu0 %v3041_v1  ;;  %v3066_v12 = vld [vmem:[#allocation6 + $0xb8] sm:$0xff]  ;;  %1012 = vmatpush.bf16.msra.mxu2 %v3050_v11  ;;  %v3065_v15 = vld [vmem:[#allocation6 + $0xb0] sm:$0xff]  ;;  %v3048_v20 = vld [vmem:[#allocation6 + $0x28] sm:$0xff]  ;;  %804 = vst [vmem:[#allocation2 + $0x98] sm:$0xff] %v3567_v28 }
  0x41   : > { %s622_s29 = scalar_lea.vmem %s4334_s20, %s3030_s26  ;;  %1118 = vmatpush.bf16.msra.mxu3 %v3066_v12  ;;  %v3064_v21 = vld [vmem:[#allocation6 + $0xa8] sm:$0xff]  ;;  %v3074_v22 = vld [vmem:[#allocation6 + $0xf8] sm:$0xff]  ;;  %v3047_v24 = vld [vmem:[#allocation6 + $0x20] sm:$0xff]  ;;  %806 = vst [vmem:[#allocation2 + $0x10] sm:$0x1] %v3567_v28  ;;  %s611_s26 = scalar_lea.vmem [#allocation14], %s4236_s16 }
  0x42   : > { %v3031_v8 = vld [vmem:[%s622_s29] sm:$0xff]  ;;  %v3032_v9 = vld [vmem:[%s622_s29 + $0x8] sm:$0xff]  ;;  %v3033_v16 = vld [vmem:[%s622_s29 + $0x10] sm:$0xff]  ;;  %807 = vst [vmem:[#allocation2 + $0x20] sm:$0x1] %v3567_v28  ;;  %s2418_s19 = scalar_lea.hbm %s4336_s18, %s3674_s25  ;;  %s2420_s20 = sshll.u32 %s611_s26, 4  ;;  %s2421_s20 = int_to_ptr.vmem [resolvable:$true] %s2420_s20 }
  0x43   : > { %936 = vmatpush.bf16.msra.mxu1 %v3057_v13  ;;  %v3034_v17 = vld [vmem:[%s622_s29 + $0x18] sm:$0xff]  ;;  %v3063_v25 = vld [vmem:[#allocation6 + $0xa0] sm:$0xff]  ;;  %v3072_v31 = vld [vmem:[#allocation6 + $0xe8] sm:$0xff]  ;;  %808 = vst [vmem:[#allocation2 + $0x30] sm:$0x1] %v3567_v28  ;;  %s2422_s29 = sshll.u32 %s2418_s19, 4  ;;  %s2423_s29 = int_to_ptr.hbm [resolvable:$true] %s2422_s29 }
  0x44   : > { %725 = vmatpush.bf16.msra.mxu0 %v3040_v2  ;;  %1013 = vmatpush.bf16.msra.mxu2 %v3049_v14  ;;  %v3054_v23 = vld [vmem:[#allocation6 + $0x58] sm:$0xff]  ;;  %v3073_v26 = vld [vmem:[#allocation6 + $0xf0] sm:$0xff]  ;;  %v3052_v32 = vld [vmem:[#allocation6 + $0x48] sm:$0xff]  ;;  %809 = vst [vmem:[#allocation2 + $0x40] sm:$0x1] %v3567_v28  ;;  %s3459_s24 = sshra.s32 %s2423_s29, 4  ;;  %s3460_s24 = int_to_ptr.hbm [resolvable:$true] %s3459_s24 }
  0x45   : > { %1119 = vmatpush.bf16.msra.mxu3 %v3065_v15  ;;  %v3053_v27 = vld [vmem:[#allocation6 + $0x50] sm:$0xff]  ;;  %v3046_v29 = vld [vmem:[#allocation6 + $0x18] sm:$0xff]  ;;  %v3071_v35 = vld [vmem:[#allocation6 + $0xe0] sm:$0xff]  ;;  %810 = vst [vmem:[#allocation2 + $0x50] sm:$0x1] %v3567_v28  ;;  %s3461_s5 = scalar_lea.hbm %s3460_s24, 1  ;;  %p3466_p3 = scmp.lt.s32.totalorder %s3460_s24, %s4336_s18 }
  0x46   : > { %v3062_v30 = vld [vmem:[#allocation6 + $0x98] sm:$0xff]  ;;  %v3045_v33 = vld [vmem:[#allocation6 + $0x10] sm:$0xff]  ;;  %v3051_v36 = vld [vmem:[#allocation6 + $0x40] sm:$0xff]  ;;  %811 = vst [vmem:[#allocation2 + $0x60] sm:$0x1] %v3567_v28  ;;  %p3462_p0 = scmp.ne.s32.totalorder %s3460_s24, %s3461_s5  ;;  %s3465_s23 = scalar_lea.hbm %s4336_s18, 2 }
  0x47   : > { %937 = vmatpush.bf16.msra.mxu1 %v3056_v18  ;;  %v3061_v34 = vld [vmem:[#allocation6 + $0x90] sm:$0xff]  ;;  %v3044_v37 = vld [vmem:[#allocation6 + $0x8] sm:$0xff]  ;;  %v3070_v39 = vld [vmem:[#allocation6 + $0xd8] sm:$0xff]  ;;  %812 = vst [vmem:[#allocation2 + $0x70] sm:$0x1] %v3567_v28  ;;  %p3467_p4 = scmp.lt.s32.totalorder %s3465_s23, %s3461_s5 }
  0x48   : > { %726 = vmatpush.bf16.msra.mxu0 %v3039_v3  ;;  %1014 = vmatpush.bf16.msra.mxu2 %v3048_v20  ;;  %v3060_v38 = vld [vmem:[#allocation6 + $0x88] sm:$0xff]  ;;  %813 = vst [vmem:[#allocation2 + $0x80] sm:$0x1] %v3567_v28  ;;  %v3043_v40 = vld [vmem:[#allocation6] sm:$0xff]  ;;  %v3069_v42 = vld [vmem:[#allocation6 + $0xd0] sm:$0xff]  ;;  %p3463_p1 = pnand %p3462_p0, %p3691_p5 }
  0x49   : > { %1120 = vmatpush.bf16.msra.mxu3 %v3064_v21  ;;  %814 = vst [vmem:[#allocation2 + $0x19] sm:$0x7f] %v3567_v28  ;;  %v3059_v41 = vld [vmem:[#allocation6 + $0x80] sm:$0xff]  ;;  %v3068_v43 = vld [vmem:[#allocation6 + $0xc8] sm:$0xff]  ;;  %v3820_v45 = vld [vmem:[%s4289_s2] ss:$0 sm:$0xff]  ;;  %p3468_p7 = por %p3467_p4, %p3466_p3 }
  0x4a   : > { %815 = vst [vmem:[#allocation2 + $0x29] sm:$0x7f] %v3567_v28  ;;  %v3067_v44 = vld [vmem:[#allocation6 + $0xc0] sm:$0xff]  ;;  %v3082_v46 = vld [vmem:[#allocation6 + $0x138] sm:$0xff]  ;;  %v3081_v53 = vld [vmem:[#allocation6 + $0x130] sm:$0xff]  ;;  %p3464_p2 = pneg %p3463_p1 }
  0x4b   : > { %938 = vmatpush.bf16.msra.mxu1 %v3055_v19  ;;  %816 = vst [vmem:[#allocation2 + $0x39] sm:$0x7f] %v3567_v28  ;;  %v3826_v50 = vld [vmem:[%s4290_s3] ss:$0 sm:$0xff]  ;;  %v858_v58 = vld [vmem:[#allocation2 + $0x1] sm:$0xff]  ;;  %v3080_v63 = vld [vmem:[#allocation6 + $0x128] sm:$0xff] }
  0x4c   : > { %727 = vmatpush.bf16.msra.mxu0 %v3038_v4  ;;  %1015 = vmatpush.bf16.msra.mxu2 %v3047_v24  ;;  %817 = vst [vmem:[#allocation2 + $0x49] sm:$0x7f] %v3567_v28  ;;  %v3828_v52 = vld [vmem:[#allocation3] ss:$0 sm:$0xff]  ;;  %v1041_v4 = vld [vmem:[#allocation2 + $0x2] sm:$0xff]  ;;  %v3089_v19 = vld [vmem:[#allocation6 + $0x170] sm:$0xff]  ;;  %p3469_p8 = pnand %p3468_p7, %p3464_p2 }
  0x4d   : > { %1121 = vmatpush.bf16.msra.mxu3 %v3063_v25  ;;  %818 = vst [vmem:[#allocation2 + $0x59] sm:$0x7f] %v3567_v28  ;;  %v3079_v12 = vld [vmem:[#allocation6 + $0x120] sm:$0xff]  ;;  %v3090_v13 = vld [vmem:[#allocation6 + $0x178] sm:$0xff]  ;;  %v3097_v20 = vld [vmem:[#allocation6 + $0x1b0] sm:$0xff] }
  0x4e   : > { %819 = vst [vmem:[#allocation2 + $0x69] sm:$0x7f] %v3567_v28  ;;  %v3098_v14 = vld [vmem:[#allocation6 + $0x1b8] sm:$0xff] }
  0x4f   : > { %939 = vmatpush.bf16.msra.mxu1 %v3054_v23  ;;  %820 = vst [vmem:[#allocation2 + $0x79] sm:$0x7f] %v3567_v28 }
  0x50   : > { %728 = vmatpush.bf16.msra.mxu0 %v3037_v5  ;;  %1016 = vmatpush.bf16.msra.mxu2 %v3046_v29  ;;  %821 = vst [vmem:[#allocation2 + $0x89] sm:$0x7f] %v3567_v28  ;;  %v3096_v29 = vld [vmem:[#allocation6 + $0x1a8] sm:$0xff] }
  0x51   : > { %1122 = vmatpush.bf16.msra.mxu3 %v3062_v30  ;;  %v3106_v30 = vld [vmem:[#allocation6 + $0x1f8] sm:$0xff] }
  0x53   : > { %940 = vmatpush.bf16.msra.mxu1 %v3053_v27  ;;  %v3078_v27 = vld [vmem:[#allocation6 + $0x118] sm:$0xff] }
  0x54   : > { %729 = vmatpush.bf16.msra.mxu0 %v3036_v6  ;;  %1017 = vmatpush.bf16.msra.mxu2 %v3045_v33 }
  0x55   : > { %1123 = vmatpush.bf16.msra.mxu3 %v3061_v34 }
  0x57   : > { %941 = vmatpush.bf16.msra.mxu1 %v3052_v32 }
  0x58   : > { %730 = vmatpush.bf16.msra.mxu0 %v3035_v7  ;;  %1018 = vmatpush.bf16.msra.mxu2 %v3044_v37  ;;  %v3095_v37 = vld [vmem:[#allocation6 + $0x1a0] sm:$0xff] }
  0x59   : > { %1124 = vmatpush.bf16.msra.mxu3 %v3060_v38 }
  0x5b   : > { %731 = vmatmul.bf16.vlgmr.msra.gmra.mxu0 %v3031_v8  ;;  %942 = vmatpush.bf16.msra.mxu1 %v3051_v36  ;;  %v3087_v36 = vld [vmem:[#allocation6 + $0x160] sm:$0xff] }
  0x5c   : > { %1232 = vmatpush.bf16.msrb.mxu0 %v3074_v22  ;;  %1019 = vmatpush.bf16.msra.mxu2 %v3043_v40  ;;  %v3105_v40 = vld [vmem:[#allocation6 + $0x1f0] sm:$0xff] }
  0x5d   : > { %1125 = vmatpush.bf16.msra.mxu3 %v3059_v41 }
  0x5f   : > { %1346 = vmatpush.bf16.msrb.mxu1 %v3082_v46 }
  0x60   : > { %1233 = vmatpush.bf16.msrb.mxu0 %v3073_v26  ;;  %1460 = vmatpush.bf16.msrb.mxu2 %v3090_v13 }
  0x61   : > { %1575 = vmatpush.bf16.msrb.mxu3 %v3098_v14 }
  0x63   : > { %1347 = vmatpush.bf16.msrb.mxu1 %v3081_v53 }
  0x64   : > { %1234 = vmatpush.bf16.msrb.mxu0 %v3072_v31  ;;  %1461 = vmatpush.bf16.msrb.mxu2 %v3089_v19 }
  0x65   : > { %1576 = vmatpush.bf16.msrb.mxu3 %v3097_v20 }
  0x67   : > { %1348 = vmatpush.bf16.msrb.mxu1 %v3080_v63 }
  0x68   : > { %1235 = vmatpush.bf16.msrb.mxu0 %v3071_v35  ;;  %v3077_v35 = vld [vmem:[#allocation6 + $0x110] sm:$0xff] }
  0x69   : > { %1577 = vmatpush.bf16.msrb.mxu3 %v3096_v29  ;;  %v3100_v29 = vld [vmem:[#allocation6 + $0x1c8] sm:$0xff] }
  0x6b   : > { %736 = vmatmul.bf16.gmra.mxu0 %v3032_v9  ;;  %1349 = vmatpush.bf16.msrb.mxu1 %v3079_v12  ;;  %v3083_v12 = vld [vmem:[#allocation6 + $0x140] sm:$0xff] }
  0x6c   : > { %1236 = vmatpush.bf16.msrb.mxu0 %v3070_v39 }
  0x6d   : > { %1578 = vmatpush.bf16.msrb.mxu3 %v3095_v37 }
  0x6f   : > { %1350 = vmatpush.bf16.msrb.mxu1 %v3078_v27 }
  0x70   : > { %1237 = vmatpush.bf16.msrb.mxu0 %v3069_v42 }
  0x73   : > { %1351 = vmatpush.bf16.msrb.mxu1 %v3077_v35 }
  0x74   : > { %1238 = vmatpush.bf16.msrb.mxu0 %v3068_v43 }
  0x78   : > { %1239 = vmatpush.bf16.msrb.mxu0 %v3067_v44 }
  0x7b   : > { %741 = vmatmul.bf16.gmra.mxu0 %v3033_v16 }
  0x7c   : > { %1689 = vmatpush.bf16.msra.mxu0 %v3106_v30 }
  0x80   : > { %1690 = vmatpush.bf16.msra.mxu0 %v3105_v40 }
  0x8b   : > { %746 = vmatmul.bf16.gmra.mxu0 %v3034_v17 }
  0xd8   : > { %v732_v47 = vpop.f32.mrf.mxu0 }
  0xd9   : > { %v733_v48 = vadd.f32 %v3820_v45, %v732_v47 }
  0xdb   : > { %v752_v49 = vmul.f32 0.01, %v733_v48 }
  0xdd   : > { %v760_v51 = vmax.f32 %v733_v48, %v752_v49  ;;  %v3076_v48 = vld [vmem:[#allocation6 + $0x108] sm:$0xff]  ;;  %v3086_v49 = vld [vmem:[#allocation6 + $0x158] sm:$0xff] }
  0xde   : > { %1352 = vmatpush.bf16.msrb.mxu1 %v3076_v48 }
  0xdf   : > { %v772_v54 = vmul.f32 %v3826_v50, %v760_v51  ;;  %v3094_v51 = vld [vmem:[#allocation6 + $0x198] sm:$0xff] }
  0xe0   : > { %v734_v55 = vpop.f32.mrf.mxu0  ;;  %1579 = vmatpush.bf16.msrb.mxu3 %v3094_v51 }
  0xe1   : > { %v784_v56 = vadd.f32 %v3828_v52, %v772_v54  ;;  %v735_v57 = vadd.f32 %v3820_v45, %v734_v55  ;;  %v3104_v54 = vld [vmem:[#allocation6 + $0x1e8] sm:$0xff] }
  0xe2   : > { %1691 = vmatpush.bf16.msra.mxu0 %v3104_v54 }
  0xe3   : > { %v3833_v59 = vmax.f32 %v784_v56, 0.0  ;;  %v753_v60 = vmul.f32 0.01, %v735_v57  ;;  %v3085_v56 = vld [vmem:[#allocation6 + $0x150] sm:$0xff] }
  0xe5   : > { %822 = vst [vmem:[#allocation2 + $0x11] sm:$0xff] %v3833_v59  ;;  %v761_v61 = vmax.f32 %v735_v57, %v753_v60  ;;  %v866_v62 = vpack.c.bf16 %v3833_v59, %v858_v58  ;;  %v3093_v60 = vld [vmem:[#allocation6 + $0x190] sm:$0xff] }
  0xe6   : > { %1580 = vmatpush.bf16.msrb.mxu3 %v3093_v60 }
  0xe7   : > { %v773_v0 = vmul.f32 %v3826_v50, %v761_v61  ;;  %943 = vmatmul.bf16.vlgmr.msra.gmra.mxu1 %v866_v62  ;;  %v3103_v61 = vld [vmem:[#allocation6 + $0x1e0] sm:$0xff] }
  0xe8   : > { %v737_v1 = vpop.f32.mrf.mxu0  ;;  %v3075_v62 = vld [vmem:[#allocation6 + $0x100] sm:$0xff]  ;;  %1692 = vmatpush.bf16.msra.mxu0 %v3103_v61  ;;  %v3110_v61 = vld [vmem:[#allocation6 + $0x218] sm:$0xff] }
  0xe9   : > { %v785_v2 = vadd.f32 %v3828_v52, %v773_v0  ;;  %v738_v3 = vadd.f32 %v3820_v45, %v737_v1  ;;  %1353 = vmatpush.bf16.msrb.mxu1 %v3075_v62 }
  0xeb   : > { %v3840_v5 = vmax.f32 %v785_v2, 0.0  ;;  %v754_v6 = vmul.f32 0.01, %v738_v3 }
  0xec   : > { %v831_v7 = vld [vmem:[#allocation2 + $0x10] sm:$0xff] }
  0xed   : > { %v3842_v8 = vld [vmem:[#allocation2 + $0x12] sm:$0xff]  ;;  %823 = vst [vmem:[#allocation2 + $0x21] sm:$0xff] %v3840_v5  ;;  %v762_v9 = vmax.f32 %v738_v3, %v754_v6  ;;  %v838_v10 = vpack.c.bf16 %v831_v7, %v3567_v28  ;;  %v3088_v28 = vld [vmem:[#allocation6 + $0x168] sm:$0xff] }
  0xee   : > { %v1049_v11 = vpack.c.bf16 %v3842_v8, %v1041_v4  ;;  %1462 = vmatpush.bf16.msrb.mxu2 %v3088_v28  ;;  %v3084_v6 = vld [vmem:[#allocation6 + $0x148] sm:$0xff]  ;;  %v3114_v28 = vld [vmem:[#allocation6 + $0x238] sm:$0xff] }
  0xef   : > { %v774_v15 = vmul.f32 %v3826_v50, %v762_v9  ;;  %1020 = vmatmul.bf16.vlgmr.msra.gmra.mxu2 %v838_v10  ;;  %v3102_v9 = vld [vmem:[#allocation6 + $0x1d8] sm:$0xff]  ;;  %1803 = vmatpush.bf16.msra.mxu1 %v3114_v28 }
  0xf0   : > { %1126 = vmatmul.bf16.vlgmr.msra.gmra.mxu3 %v1049_v11  ;;  %v739_v16 = vpop.f32.mrf.mxu0  ;;  %1693 = vmatpush.bf16.msra.mxu0 %v3102_v9 }
  0xf1   : > { %v786_v17 = vadd.f32 %v3828_v52, %v774_v15  ;;  %v740_v18 = vadd.f32 %v3820_v45, %v739_v16  ;;  %v3091_v15 = vld [vmem:[#allocation6 + $0x180] sm:$0xff]  ;;  %v3101_v16 = vld [vmem:[#allocation6 + $0x1d0] sm:$0xff] }
  0xf2   : > { %1463 = vmatpush.bf16.msrb.mxu2 %v3087_v36 }
  0xf3   : > { %v3850_v21 = vmax.f32 %v786_v17, 0.0  ;;  %v755_v22 = vmul.f32 0.01, %v740_v18 }
  0xf4   : > { %v1156_v23 = vld [vmem:[#allocation2 + $0x20] sm:$0xff]  ;;  %1694 = vmatpush.bf16.msra.mxu0 %v3101_v16 }
  0xf5   : > { %824 = vst [vmem:[#allocation2 + $0x31] sm:$0xff] %v3850_v21  ;;  %v763_v24 = vmax.f32 %v740_v18, %v755_v22  ;;  %v1163_v25 = vpack.c.bf16 %v1156_v23, %v831_v7  ;;  %v3855_v26 = vpack.c.bf16 %v3850_v21, %v3840_v5  ;;  %v3863_v42 = vld [vmem:[#allocation2 + $0x22] sm:$0xff]  ;;  %v3092_v7 = vld [vmem:[#allocation6 + $0x188] sm:$0xff] }
  0xf6   : > { %1464 = vmatpush.bf16.msrb.mxu2 %v3086_v49  ;;  %1581 = vmatpush.bf16.msrb.mxu3 %v3092_v7  ;;  %v1391_v60 = vpack.c.bf16 %v3863_v42, %v3842_v8  ;;  %v3107_v8 = vld [vmem:[#allocation6 + $0x200] sm:$0xff] }
  0xf7   : > { %v775_v31 = vmul.f32 %v3826_v50, %v763_v24  ;;  %1240 = vmatmul.bf16.vlgmr.msrb.gmra.mxu0 %v1163_v25  ;;  %948 = vmatmul.bf16.gmra.mxu1 %v3855_v26 }
  0xf8   : > { %v742_v32 = vpop.f32.mrf.mxu0  ;;  %1695 = vmatpush.bf16.msra.mxu0 %v3100_v29 }
  0xf9   : > { %v787_v33 = vadd.f32 %v3828_v52, %v775_v31  ;;  %v743_v34 = vadd.f32 %v3820_v45, %v742_v32 }
  0xfa   : > { %1465 = vmatpush.bf16.msrb.mxu2 %v3085_v56  ;;  %1582 = vmatpush.bf16.msrb.mxu3 %v3091_v15  ;;  %v3112_v56 = vld [vmem:[#allocation6 + $0x228] sm:$0xff] }
  0xfb   : > { %v3861_v38 = vmax.f32 %v787_v33, 0.0  ;;  %v756_v39 = vmul.f32 0.01, %v743_v34  ;;  %v3099_v33 = vld [vmem:[#allocation6 + $0x1c0] sm:$0xff] }
  0xfc   : > { %v833_v41 = vld [vmem:[#allocation2 + $0x30] sm:$0xff]  ;;  %1696 = vmatpush.bf16.msra.mxu0 %v3099_v33 }
  0xfd   : > { %v3865_v43 = vld [vmem:[#allocation2 + $0x32] sm:$0xff]  ;;  %825 = vst [vmem:[#allocation2 + $0x41] sm:$0xff] %v3861_v38  ;;  %v764_v44 = vmax.f32 %v743_v34, %v756_v39  ;;  %v3868_v46 = vpack.c.bf16 %v833_v41, %v1156_v23  ;;  %v1278_v62 = vpack.c.bf16 %v3861_v38, %v3850_v21 }
  0xfe   : > { %v3872_v47 = vpack.c.bf16 %v3865_v43, %v3863_v42  ;;  %1466 = vmatpush.bf16.msrb.mxu2 %v3084_v6 }
  0xff   : > { %v776_v53 = vmul.f32 %v3826_v50, %v764_v44  ;;  %1025 = vmatmul.bf16.gmra.mxu2 %v3868_v46  ;;  %v3113_v44 = vld [vmem:[#allocation6 + $0x230] sm:$0xff] }
 0x100   : > { %1131 = vmatmul.bf16.gmra.mxu3 %v3872_v47  ;;  %v744_v55 = vpop.f32.mrf.mxu0  ;;  %1804 = vmatpush.bf16.msra.mxu1 %v3113_v44 }
 0x101   : > { %v788_v57 = vadd.f32 %v3828_v52, %v776_v53  ;;  %v745_v58 = vadd.f32 %v3820_v45, %v744_v55 }
 0x102   : > { %1467 = vmatpush.bf16.msrb.mxu2 %v3083_v12 }
 0x103   : > { %v3879_v63 = vmax.f32 %v788_v57, 0.0  ;;  %v757_v0 = vmul.f32 0.01, %v745_v58 }
 0x104   : > { %v1158_v1 = vld [vmem:[#allocation2 + $0x40] sm:$0xff]  ;;  %1805 = vmatpush.bf16.msra.mxu1 %v3112_v56  ;;  %v3121_v56 = vld [vmem:[%s4294_s7 + $0x30] sm:$0xff] }
 0x105   : > { %826 = vst [vmem:[#allocation2 + $0x51] sm:$0xff] %v3879_v63  ;;  %v765_v2 = vmax.f32 %v745_v58, %v757_v0  ;;  %v1164_v3 = vpack.c.bf16 %v1158_v1, %v833_v41  ;;  %v3884_v4 = vpack.c.bf16 %v3879_v63, %v3861_v38  ;;  %v3892_v20 = vld [vmem:[#allocation2 + $0x42] sm:$0xff]  ;;  %v1277_v58 = vpack.c.bf16 %v3840_v5, %v3833_v59  ;;  %v3109_v0 = vld [vmem:[#allocation6 + $0x210] sm:$0xff]  ;;  %v3108_v5 = vld [vmem:[#allocation6 + $0x208] sm:$0xff] }
 0x106   : > { %v1392_v59 = vpack.c.bf16 %v3892_v20, %v3865_v43 }
 0x107   : > { %v777_v10 = vmul.f32 %v3826_v50, %v765_v2  ;;  %1245 = vmatmul.bf16.gmra.mxu0 %v1164_v3  ;;  %953 = vmatmul.bf16.gmra.mxu1 %v3884_v4 }
 0x108   : > { %v747_v11 = vpop.f32.mrf.mxu0 }
 0x109   : > { %v789_v13 = vadd.f32 %v3828_v52, %v777_v10  ;;  %v748_v14 = vadd.f32 %v3820_v45, %v747_v11 }
 0x10b   : > { %v3890_v17 = vmax.f32 %v789_v13, 0.0  ;;  %v758_v18 = vmul.f32 0.01, %v748_v14 }
 0x10c   : > { %v835_v19 = vld [vmem:[#allocation2 + $0x50] sm:$0xff] }
 0x10d   : > { %v3894_v22 = vld [vmem:[#allocation2 + $0x52] sm:$0xff]  ;;  %827 = vst [vmem:[#allocation2 + $0x61] sm:$0xff] %v3890_v17  ;;  %v766_v23 = vmax.f32 %v748_v14, %v758_v18  ;;  %v840_v24 = vpack.c.bf16 %v835_v19, %v1158_v1  ;;  %v1279_v42 = vpack.c.bf16 %v3890_v17, %v3879_v63 }
 0x10e   : > { %v3899_v25 = vpack.c.bf16 %v3894_v22, %v3892_v20  ;;  %v3925_v1 = vld [vmem:[#allocation2 + $0x91] sm:$0xff] }
 0x10f   : > { %v778_v27 = vmul.f32 %v3826_v50, %v766_v23  ;;  %1030 = vmatmul.bf16.gmra.mxu2 %v840_v24 }
 0x110   : > { %1136 = vmatmul.bf16.gmra.mxu3 %v3899_v25  ;;  %v749_v30 = vpop.f32.mrf.mxu0 }
 0x111   : > { %v790_v31 = vadd.f32 %v3828_v52, %v778_v27  ;;  %v750_v32 = vadd.f32 %v3820_v45, %v749_v30 }
 0x113   : > { %v798_v34 = vmax.f32 %v790_v31, 0.0  ;;  %v759_v35 = vmul.f32 0.01, %v750_v32  ;;  %v3949_v31 = vld [vmem:[#allocation2 + $0x92] sm:$0xff] }
 0x114   : > { %v1160_v36 = vld [vmem:[#allocation2 + $0x60] sm:$0xff] }
 0x115   : > { %828 = vst [vmem:[#allocation2 + $0x71] sm:$0xff] %v798_v34  ;;  %v767_v37 = vmax.f32 %v750_v32, %v759_v35  ;;  %v1165_v39 = vpack.c.bf16 %v1160_v36, %v835_v19  ;;  %v869_v40 = vpack.c.bf16 %v798_v34, %v3890_v17  ;;  %v1047_v51 = vld [vmem:[#allocation2 + $0x62] sm:$0xff] }
 0x116   : > { %v1393_v21 = vpack.c.bf16 %v1047_v51, %v3894_v22 }
 0x117   : > { %v779_v41 = vmul.f32 %v3826_v50, %v767_v37  ;;  %1250 = vmatmul.bf16.gmra.mxu0 %v1165_v39  ;;  %958 = vmatmul.bf16.gmra.mxu1 %v869_v40 }
 0x119   : > { %v791_v48 = vadd.f32 %v3828_v52, %v779_v41  ;;  %v3111_v52 = vld [vmem:[#allocation6 + $0x220] sm:$0xff] }
 0x11a   : > { %1806 = vmatpush.bf16.msra.mxu1 %v3111_v52  ;;  %v3120_v52 = vld [vmem:[%s4294_s7 + $0x28] sm:$0xff] }
 0x11b   : > { %v799_v45 = vmax.f32 %v791_v48, 0.0  ;;  %v3122_v48 = vld [vmem:[%s4294_s7 + $0x38] sm:$0xff] }
 0x11c   : > { %v837_v49 = vld [vmem:[#allocation2 + $0x70] sm:$0xff]  ;;  %1924 = vmatpush.bf16.msra.mxu2 %v3122_v48 }
 0x11d   : > { %v1048_v53 = vld [vmem:[#allocation2 + $0x72] sm:$0xff]  ;;  %829 = vst [vmem:[#allocation2 + $0x81] sm:$0xff] %v799_v45  ;;  %v841_v54 = vpack.c.bf16 %v837_v49, %v1160_v36  ;;  %v1623_v63 = vpack.c.bf16 %v3925_v1, %v799_v45 }
 0x11e   : > { %v3908_v55 = vpack.c.bf16 %v1048_v53, %v1047_v51  ;;  %1807 = vmatpush.bf16.msra.mxu1 %v3110_v61 }
 0x11f   : > { %1035 = vmatmul.bf16.gmra.mxu2 %v841_v54 }
 0x120   : > { %1141 = vmatmul.bf16.gmra.mxu3 %v3908_v55  ;;  %1925 = vmatpush.bf16.msra.mxu2 %v3121_v56 }
 0x122   : > { %1808 = vmatpush.bf16.msra.mxu1 %v3109_v0 }
 0x124   : > { %v1162_v50 = vld [vmem:[#allocation2 + $0x80] sm:$0xff]  ;;  %1926 = vmatpush.bf16.msra.mxu2 %v3120_v52 }
 0x125   : > { %v1166_v57 = vpack.c.bf16 %v1162_v50, %v837_v49  ;;  %v1390_v38 = vld [vmem:[#allocation2 + $0x82] sm:$0xff] }
 0x126   : > { %1809 = vmatpush.bf16.msra.mxu1 %v3108_v5  ;;  %v1394_v43 = vpack.c.bf16 %v1390_v38, %v1048_v53  ;;  %v1737_v36 = vpack.c.bf16 %v3949_v31, %v1390_v38 }
 0x127   : > { %1255 = vmatmul.bf16.gmra.mxu0 %v1166_v57  ;;  %1354 = vmatmul.bf16.vlgmr.msrb.gmra.mxu1 %v1277_v58 }
 0x12a   : > { %1810 = vmatpush.bf16.msra.mxu1 %v3107_v8 }
 0x12f   : > { %1468 = vmatmul.bf16.vlgmr.msrb.gmra.mxu2 %v1391_v60 }
 0x130   : > { %1583 = vmatmul.bf16.vlgmr.msrb.gmra.mxu3 %v3868_v46  ;;  %v1509_v46 = vpack.c.bf16 0.0, %v1162_v50 }
 0x137   : > { %1697 = vmatmul.bf16.vlgmr.msra.gmra.mxu0 %v3855_v26  ;;  %1359 = vmatmul.bf16.gmra.mxu1 %v1278_v62  ;;  %v1280_v26 = vpack.c.bf16 %v799_v45, %v798_v34  ;;  %v3119_v62 = vld [vmem:[%s4294_s7 + $0x20] sm:$0xff] }
 0x138   : > { %1927 = vmatpush.bf16.msra.mxu2 %v3119_v62 }
 0x13f   : > { %1473 = vmatmul.bf16.gmra.mxu2 %v1392_v59  ;;  %v3118_v59 = vld [vmem:[%s4294_s7 + $0x18] sm:$0xff] }
 0x140   : > { %1588 = vmatmul.bf16.gmra.mxu3 %v840_v24  ;;  %1928 = vmatpush.bf16.msra.mxu2 %v3118_v59 }
 0x147   : > { %1702 = vmatmul.bf16.gmra.mxu0 %v3884_v4  ;;  %1364 = vmatmul.bf16.gmra.mxu1 %v1279_v42 }
 0x14f   : > { %1478 = vmatmul.bf16.gmra.mxu2 %v1393_v21  ;;  %v3117_v21 = vld [vmem:[%s4294_s7 + $0x10] sm:$0xff] }
 0x150   : > { %1593 = vmatmul.bf16.gmra.mxu3 %v841_v54  ;;  %1929 = vmatpush.bf16.msra.mxu2 %v3117_v21 }
 0x157   : > { %1707 = vmatmul.bf16.gmra.mxu0 %v869_v40  ;;  %1369 = vmatmul.bf16.gmra.mxu1 %v1280_v26 }
 0x15f   : > { %1483 = vmatmul.bf16.gmra.mxu2 %v1394_v43 }
 0x160   : > { %1598 = vmatmul.bf16.gmra.mxu3 %v1509_v46  ;;  %v3116_v46 = vld [vmem:[%s4294_s7 + $0x8] sm:$0xff] }
 0x161   : > { %1930 = vmatpush.bf16.msra.mxu2 %v3116_v46 }
 0x164   : > { %v944_v2 = vpop.f32.mrf.mxu1 }
 0x167   : > { %1712 = vmatmul.bf16.gmra.mxu0 %v1623_v63  ;;  %1811 = vmatmul.bf16.vlgmr.msra.gmra.mxu1 %v3872_v47  ;;  %v3115_v63 = vld [vmem:[%s4294_s7] sm:$0xff] }
 0x168   : > { %1931 = vmatpush.bf16.msra.mxu2 %v3115_v63 }
 0x16c   : > { %v3929_v3 = vpop.f32.mrf.mxu1 }
 0x172   : > { %v1021_v4 = vpop.f32.mrf.mxu2 }
 0x173   : > { %v1127_v6 = vpop.f32.mrf.mxu3  ;;  %v1022_v7 = vadd.f32 %v1021_v4, %v944_v2 }
 0x174   : > { %v1241_v9 = vpop.f32.mrf.mxu0  ;;  %v949_v10 = vpop.f32.mrf.mxu1 }
 0x175   : > { %v1147_v11 = vadd.f32 %v1127_v6, %v1022_v7 }
 0x177   : > { %v1261_v12 = vadd.f32 %v1241_v9, %v1147_v11  ;;  %1816 = vmatmul.bf16.gmra.mxu1 %v3899_v25 }
 0x17a   : > { %v3932_v13 = vpop.f32.mrf.mxu2 }
 0x17b   : > { %v3934_v14 = vpop.f32.mrf.mxu3  ;;  %v1024_v11 = vadd.f32 %v3932_v13, %v3929_v3 }
 0x17c   : > { %v3936_v15 = vpop.f32.mrf.mxu0  ;;  %v3938_v16 = vpop.f32.mrf.mxu1 }
 0x182   : > { %v1026_v47 = vpop.f32.mrf.mxu2 }
 0x183   : > { %v1132_v17 = vpop.f32.mrf.mxu3  ;;  %v1027_v18 = vadd.f32 %v1026_v47, %v949_v10  ;;  %v1148_v47 = vadd.f32 %v3934_v14, %v1024_v11 }
 0x184   : > { %v1246_v19 = vpop.f32.mrf.mxu0  ;;  %v954_v20 = vpop.f32.mrf.mxu1 }
 0x185   : > { %v1149_v22 = vadd.f32 %v1132_v17, %v1027_v18 }
 0x187   : > { %v1263_v23 = vadd.f32 %v1246_v19, %v1149_v22  ;;  %1821 = vmatmul.bf16.gmra.mxu1 %v3908_v55 }
 0x18a   : > { %v3941_v24 = vpop.f32.mrf.mxu2 }
 0x18b   : > { %v3943_v25 = vpop.f32.mrf.mxu3 }
 0x18c   : > { %v3945_v27 = vpop.f32.mrf.mxu0  ;;  %v3947_v28 = vpop.f32.mrf.mxu1 }
 0x192   : > { %v1031_v29 = vpop.f32.mrf.mxu2 }
 0x193   : > { %v1137_v30 = vpop.f32.mrf.mxu3  ;;  %v1032_v32 = vadd.f32 %v1031_v29, %v954_v20  ;;  %v1262_v20 = vadd.f32 %v3936_v15, %v1148_v47  ;;  %v4006_v15 = vld [vmem:[%s4293_s6] ss:$0 sm:$0xff] }
 0x194   : > { %v1251_v33 = vpop.f32.mrf.mxu0  ;;  %v959_v34 = vpop.f32.mrf.mxu1 }
 0x195   : > { %v1151_v35 = vadd.f32 %v1137_v30, %v1032_v32 }
 0x197   : > { %v1265_v37 = vadd.f32 %v1251_v33, %v1151_v35  ;;  %1826 = vmatmul.bf16.gmra.mxu1 %v1737_v36 }
 0x19a   : > { %v3952_v39 = vpop.f32.mrf.mxu2 }
 0x19b   : > { %v3954_v40 = vpop.f32.mrf.mxu3 }
 0x19c   : > { %v3956_v41 = vpop.f32.mrf.mxu0  ;;  %v3958_v44 = vpop.f32.mrf.mxu1 }
 0x1a2   : > { %v1036_v45 = vpop.f32.mrf.mxu2 }
 0x1a3   : > { %v1037_v49 = vadd.f32 %v1036_v45, %v959_v34  ;;  %v1142_v51 = vpop.f32.mrf.mxu3  ;;  %v1029_v34 = vadd.f32 %v3941_v24, %v3938_v16 }
 0x1a4   : > { %v1355_v53 = vpop.f32.mrf.mxu1  ;;  %v1256_v50 = vpop.f32.mrf.mxu0 }
 0x1a5   : > { %v1153_v54 = vadd.f32 %v1142_v51, %v1037_v49  ;;  %v1375_v55 = vadd.f32 %v1355_v53, %v1261_v12  ;;  %v1150_v14 = vadd.f32 %v3943_v25, %v1029_v34 }
 0x1a7   : > { %v1267_v57 = vadd.f32 %v1256_v50, %v1153_v54  ;;  %v1264_v53 = vadd.f32 %v3945_v27, %v1150_v14 }
 0x1aa   : > { %v3975_v5 = vpop.f32.mrf.mxu2 }
 0x1ab   : > { %v3982_v26 = vpop.f32.mrf.mxu3 }
 0x1ac   : > { %v1357_v58 = vpop.f32.mrf.mxu1  ;;  %v3984_v38 = vpop.f32.mrf.mxu0 }
 0x1b2   : > { %v1469_v43 = vpop.f32.mrf.mxu2 }
 0x1b3   : > { %v1584_v4 = vpop.f32.mrf.mxu3  ;;  %v1489_v22 = vadd.f32 %v1469_v43, %v1375_v55 }
 0x1b4   : > { %v1360_v60 = vpop.f32.mrf.mxu1  ;;  %v1698_v6 = vpop.f32.mrf.mxu0 }
 0x1b5   : > { %v1377_v61 = vadd.f32 %v1360_v60, %v1263_v23  ;;  %v1376_v23 = vadd.f32 %v1357_v58, %v1262_v20  ;;  %v1604_v33 = vadd.f32 %v1584_v4, %v1489_v22  ;;  %v1034_v60 = vadd.f32 %v3952_v39, %v3947_v28 }
 0x1b6   : > { %v1039_v20 = vadd.f32 %v3975_v5, %v3958_v44 }
 0x1b7   : > { %v1718_v36 = vadd.f32 %v1698_v6, %v1604_v33  ;;  %v1152_v27 = vadd.f32 %v3954_v40, %v1034_v60 }
 0x1b9   : > { %v1266_v4 = vadd.f32 %v3956_v41, %v1152_v27 }
 0x1ba   : > { %v1471_v7 = vpop.f32.mrf.mxu2 }
 0x1bb   : > { %v1586_v12 = vpop.f32.mrf.mxu3  ;;  %v1490_v29 = vadd.f32 %v1471_v7, %v1376_v23  ;;  %v1154_v23 = vadd.f32 %v3982_v26, %v1039_v20  ;;  %v3127_v20 = vld [vmem:[%s4298_s11 + $0x20] sm:$0xff] }
 0x1bc   : > { %v1362_v0 = vpop.f32.mrf.mxu1  ;;  %v1700_v18 = vpop.f32.mrf.mxu0 }
 0x1bd   : > { %v1605_v35 = vadd.f32 %v1586_v12, %v1490_v29  ;;  %v1378_v55 = vadd.f32 %v1362_v0, %v1264_v53  ;;  %v1268_v33 = vadd.f32 %v3984_v38, %v1154_v23 }
 0x1c2   : > { %v1474_v19 = vpop.f32.mrf.mxu2 }
 0x1c3   : > { %v1589_v30 = vpop.f32.mrf.mxu3  ;;  %v1491_v54 = vadd.f32 %v1474_v19, %v1377_v61 }
 0x1c4   : > { %v1365_v8 = vpop.f32.mrf.mxu1  ;;  %v1703_v3 = vpop.f32.mrf.mxu0 }
 0x1c5   : > { %v3977_v42 = vadd.f32 %v1365_v8, %v1265_v37  ;;  %v1719_v37 = vadd.f32 %v1700_v18, %v1605_v35  ;;  %v1606_v52 = vadd.f32 %v1589_v30, %v1491_v54 }
 0x1c7   : > { %v1720_v8 = vadd.f32 %v1703_v3, %v1606_v52 }
 0x1ca   : > { %v1476_v13 = vpop.f32.mrf.mxu2 }
 0x1cb   : > { %v1591_v51 = vpop.f32.mrf.mxu3 }
 0x1cc   : > { %v1367_v2 = vpop.f32.mrf.mxu1  ;;  %v1705_v56 = vpop.f32.mrf.mxu0 }
 0x1cd   : > { %v1380_v28 = vadd.f32 %v1367_v2, %v1266_v4  ;;  %v2003_v4 = vld [vmem:[#allocation2 + $0x1] sm:$0xff] }
 0x1d2   : > { %v1479_v50 = vpop.f32.mrf.mxu2 }
 0x1d3   : > { %v1594_v59 = vpop.f32.mrf.mxu3 }
 0x1d4   : > { %v1370_v9 = vpop.f32.mrf.mxu1  ;;  %v1708_v43 = vpop.f32.mrf.mxu0 }
 0x1d5   : > { %v3992_v10 = vadd.f32 %v1370_v9, %v1267_v57  ;;  %v1492_v57 = vadd.f32 %v1476_v13, %v1378_v55  ;;  %v1493_v9 = vadd.f32 %v1479_v50, %v3977_v42 }
 0x1d7   : > { %v1607_v62 = vadd.f32 %v1591_v51, %v1492_v57  ;;  %v1608_v47 = vadd.f32 %v1594_v59, %v1493_v9  ;;  %v4056_v9 = vld [vmem:[#allocation8 + $0x1] ss:$0 sm:$0xff] }
 0x1d9   : > { %v1721_v21 = vadd.f32 %v1705_v56, %v1607_v62  ;;  %v1722_v41 = vadd.f32 %v1708_v43, %v1608_v47  ;;  %v3130_v62 = vld [vmem:[%s4298_s11 + $0x38] sm:$0xff]  ;;  %v3129_v43 = vld [vmem:[%s4298_s11 + $0x30] sm:$0xff] }
 0x1da   : > { %v1481_v61 = vpop.f32.mrf.mxu2  ;;  %2311 = vmatpush.bf16.msra.mxu3 %v3130_v62 }
 0x1db   : > { %v1596_v11 = vpop.f32.mrf.mxu3  ;;  %v1494_v12 = vadd.f32 %v1481_v61, %v1380_v28  ;;  %v3128_v28 = vld [vmem:[%s4298_s11 + $0x28] sm:$0xff] }
 0x1dc   : > { %v3997_v17 = vpop.f32.mrf.mxu1  ;;  %v1710_v18 = vpop.f32.mrf.mxu0 }
 0x1dd   : > { %v1609_v22 = vadd.f32 %v1596_v11, %v1494_v12  ;;  %v1382_v44 = vadd.f32 %v3997_v17, %v1268_v33  ;;  %v4031_v17 = vld [vmem:[%s4295_s8] ss:$0 sm:$0xff]  ;;  %v2013_v11 = vmul.f32 %v4056_v9, %v2003_v4  ;;  %v4064_v12 = vld [vmem:[#allocation8 + $0x2] ss:$0 sm:$0xff] }
 0x1de   : > { %2312 = vmatpush.bf16.msra.mxu3 %v3129_v43 }
 0x1df   : > { %v1723_v29 = vadd.f32 %v1710_v18, %v1609_v22  ;;  %v2029_v18 = vld [vmem:[#allocation2 + $0x2] sm:$0xff] }
 0x1e2   : > { %v1484_v19 = vpop.f32.mrf.mxu2  ;;  %2313 = vmatpush.bf16.msra.mxu3 %v3128_v28 }
 0x1e4   : > { %v1812_v32 = vpop.f32.mrf.mxu1  ;;  %v1713_v3 = vpop.f32.mrf.mxu0 }
 0x1e5   : > { %v1832_v48 = vadd.f32 %v1812_v32, %v1718_v36  ;;  %v1599_v32 = vpop.f32.mrf.mxu3  ;;  %v1495_v36 = vadd.f32 %v1484_v19, %v3992_v10 }
 0x1e6   : > { %2314 = vmatpush.bf16.msra.mxu3 %v3127_v20 }
 0x1e7   : > { %v1844_v16 = vadd.f32 %v4006_v15, %v1832_v48 }
 0x1ea   : > { %v1486_v13 = vpop.f32.mrf.mxu2 }
 0x1eb   : > { %v1496_v14 = vadd.f32 %v1486_v13, %v1382_v44 }
 0x1ec   : > { %v1814_v45 = vpop.f32.mrf.mxu1  ;;  %v1715_v51 = vpop.f32.mrf.mxu0 }
 0x1ed   : > { %v1833_v49 = vadd.f32 %v1814_v45, %v1719_v37  ;;  %v1610_v37 = vadd.f32 %v1599_v32, %v1495_v36  ;;  %v1601_v48 = vpop.f32.mrf.mxu3  ;;  %v2039_v32 = vmul.f32 %v4064_v12, %v2029_v18 }
 0x1ee   : > { %v1611_v45 = vadd.f32 %v1601_v48, %v1496_v14 }
 0x1ef   : > { %v1845_v24 = vadd.f32 %v4006_v15, %v1833_v49  ;;  %v1724_v49 = vadd.f32 %v1713_v3, %v1610_v37 }
 0x1f0   : > { %v1725_v38 = vadd.f32 %v1715_v51, %v1611_v45 }
 0x1f1   : > { %v1852_v25 = vpack.c.bf16 %v1845_v24, %v1844_v16 }
 0x1f3   : > { %1932 = vmatmul.bf16.vlgmr.msra.gmra.mxu2 %v1852_v25 }
 0x1f4   : > { %v1817_v58 = vpop.f32.mrf.mxu1 }
 0x1f5   : > { %v1834_v46 = vadd.f32 %v1817_v58, %v1720_v8 }
 0x1f7   : > { %v1846_v6 = vadd.f32 %v4006_v15, %v1834_v46 }
 0x1fc   : > { %v1819_v0 = vpop.f32.mrf.mxu1 }
 0x1fd   : > { %v1835_v63 = vadd.f32 %v1819_v0, %v1721_v21 }
 0x1ff   : > { %v1847_v7 = vadd.f32 %v4006_v15, %v1835_v63  ;;  %v4052_v63 = vld [vmem:[#allocation8] ss:$0 sm:$0xff] }
 0x201   : > { %v1853_v39 = vpack.c.bf16 %v1847_v7, %v1846_v6 }
 0x203   : > { %1937 = vmatmul.bf16.gmra.mxu2 %v1853_v39  ;;  %v1987_v39 = vmul.f32 0.0, %v4052_v63 }
 0x204   : > { %v1822_v40 = vpop.f32.mrf.mxu1 }
 0x205   : > { %v1836_v30 = vadd.f32 %v1822_v40, %v1722_v41 }
 0x207   : > { %v1848_v34 = vadd.f32 %v4006_v15, %v1836_v30 }
 0x20c   : > { %v1824_v42 = vpop.f32.mrf.mxu1 }
 0x20d   : > { %v1837_v2 = vadd.f32 %v1824_v42, %v1723_v29  ;;  %v2021_v29 = vadd.f32 %v2013_v11, %v1987_v39  ;;  %v4078_v42 = vld [vmem:[#allocation8 + $0x3] ss:$0 sm:$0xff]  ;;  %v4134_v11 = vld [vmem:[#allocation8 + $0x6] ss:$0 sm:$0xff] }
 0x20f   : > { %v1849_v35 = vadd.f32 %v4006_v15, %v1837_v2  ;;  %v2047_v14 = vadd.f32 %v2039_v32, %v2021_v29 }
 0x211   : > { %v1854_v5 = vpack.c.bf16 %v1849_v35, %v1848_v34  ;;  %v3126_v34 = vld [vmem:[%s4298_s11 + $0x18] sm:$0xff] }
 0x212   : > { %2315 = vmatpush.bf16.msra.mxu3 %v3126_v34  ;;  %v3123_v34 = vld [vmem:[%s4298_s11] sm:$0xff] }
 0x213   : > { %1942 = vmatmul.bf16.gmra.mxu2 %v1854_v5 }
 0x214   : > { %v1827_v26 = vpop.f32.mrf.mxu1 }
 0x215   : > { %v1838_v53 = vadd.f32 %v1827_v26, %v1724_v49 }
 0x217   : > { %v1850_v54 = vadd.f32 %v4006_v15, %v1838_v53 }
 0x21c   : > { %v1829_v16 = vpop.f32.mrf.mxu1 }
 0x21d   : > { %v1839_v24 = vadd.f32 %v1829_v16, %v1725_v38  ;;  %v3125_v38 = vld [vmem:[%s4298_s11 + $0x10] sm:$0xff]  ;;  %v4104_v16 = vld [vmem:[#allocation8 + $0x4] ss:$0 sm:$0xff] }
 0x21e   : > { %2316 = vmatpush.bf16.msra.mxu3 %v3125_v38 }
 0x21f   : > { %v1851_v55 = vadd.f32 %v4006_v15, %v1839_v24 }
 0x221   : > { %v1855_v10 = vpack.c.bf16 %v1851_v55, %v1850_v54 }
 0x223   : > { %1947 = vmatmul.bf16.gmra.mxu2 %v1855_v10 }
 0x276   : > { %v1933_v56 = vpop.f32.mrf.mxu2 }
 0x277   : > { %v1934_v25 = vadd.f32 %v4031_v17, %v1933_v56 }
 0x279   : > { %v1953_v50 = vmul.f32 0.01, %v1934_v25 }
 0x27b   : > { %v4034_v57 = vmax.f32 %v1934_v25, %v1953_v50 }
 0x27d   : > { %1969 = vst [vmem:[#allocation2 + $0x11] sm:$0xff] %v4034_v57  ;;  %v2014_v41 = vmul.f32 %v4056_v9, %v4034_v57 }
 0x27e   : > { %v1935_v58 = vpop.f32.mrf.mxu2 }
 0x27f   : > { %v1936_v52 = vadd.f32 %v4031_v17, %v1935_v58 }
 0x281   : > { %v1954_v60 = vmul.f32 0.01, %v1936_v52 }
 0x283   : > { %v4038_v15 = vmax.f32 %v1936_v52, %v1954_v60 }
 0x284   : > { %v1978_v7 = vld [vmem:[#allocation2 + $0x10] sm:$0xff] }
 0x285   : > { %1970 = vst [vmem:[#allocation2 + $0x21] sm:$0xff] %v4038_v15  ;;  %v1988_v47 = vmul.f32 %v4052_v63, %v1978_v7  ;;  %v4075_v30 = vld [vmem:[#allocation2 + $0x12] sm:$0xff]  ;;  %v2015_v5 = vmul.f32 %v4056_v9, %v4038_v15  ;;  %v2065_v26 = vmul.f32 %v4078_v42, %v1978_v7  ;;  %v2092_v62 = vmul.f32 %v4104_v16, %v4038_v15 }
 0x286   : > { %v1938_v59 = vpop.f32.mrf.mxu2  ;;  %v2040_v13 = vmul.f32 %v4064_v12, %v4075_v30 }
 0x287   : > { %v1939_v8 = vadd.f32 %v4031_v17, %v1938_v59  ;;  %v2022_v2 = vadd.f32 %v2014_v41, %v1988_v47  ;;  %v2073_v58 = vadd.f32 %v2065_v26, %v2047_v14 }
 0x289   : > { %v1955_v27 = vmul.f32 0.01, %v1939_v8  ;;  %v2048_v49 = vadd.f32 %v2040_v13, %v2022_v2 }
 0x28b   : > { %v4045_v21 = vmax.f32 %v1939_v8, %v1955_v27  ;;  %v3124_v8 = vld [vmem:[%s4298_s11 + $0x8] sm:$0xff] }
 0x28c   : > { %v4071_v22 = vld [vmem:[#allocation2 + $0x20] sm:$0xff]  ;;  %2317 = vmatpush.bf16.msra.mxu3 %v3124_v8 }
 0x28d   : > { %1971 = vst [vmem:[#allocation2 + $0x31] sm:$0xff] %v4045_v21  ;;  %v1989_v3 = vmul.f32 %v4052_v63, %v4071_v22  ;;  %v2066_v36 = vmul.f32 %v4078_v42, %v4071_v22  ;;  %v4098_v45 = vld [vmem:[#allocation2 + $0x22] sm:$0xff]  ;;  %v2016_v54 = vmul.f32 %v4056_v9, %v4045_v21  ;;  %v2093_v13 = vmul.f32 %v4104_v16, %v4045_v21 }
 0x28e   : > { %v1940_v46 = vpop.f32.mrf.mxu2  ;;  %v2041_v25 = vmul.f32 %v4064_v12, %v4098_v45 }
 0x28f   : > { %v1941_v61 = vadd.f32 %v4031_v17, %v1940_v46  ;;  %v2023_v53 = vadd.f32 %v2015_v5, %v1989_v3  ;;  %v2074_v55 = vadd.f32 %v2066_v36, %v2048_v49  ;;  %v2091_v46 = vmul.f32 %v4104_v16, %v4034_v57 }
 0x290   : > { %2318 = vmatpush.bf16.msra.mxu3 %v3123_v34 }
 0x291   : > { %v1956_v0 = vmul.f32 0.01, %v1941_v61  ;;  %v2049_v43 = vadd.f32 %v2041_v25, %v2023_v53  ;;  %v2100_v39 = vadd.f32 %v2092_v62, %v2074_v55  ;;  %v2099_v18 = vadd.f32 %v2091_v46, %v2073_v58 }
 0x293   : > { %v4054_v6 = vmax.f32 %v1941_v61, %v1956_v0  ;;  %v4128_v61 = vld [vmem:[#allocation8 + $0x5] ss:$0 sm:$0xff] }
 0x294   : > { %v1980_v35 = vld [vmem:[#allocation2 + $0x30] sm:$0xff]  ;;  %v2118_v57 = vmul.f32 %v4128_v61, %v4098_v45  ;;  %v2117_v36 = vmul.f32 %v4128_v61, %v4075_v30 }
 0x295   : > { %1972 = vst [vmem:[#allocation2 + $0x41] sm:$0xff] %v4054_v6  ;;  %v1990_v48 = vmul.f32 %v4052_v63, %v1980_v35  ;;  %v4110_v56 = vld [vmem:[#allocation2 + $0x32] sm:$0xff]  ;;  %v2067_v50 = vmul.f32 %v4078_v42, %v1980_v35  ;;  %v2017_v52 = vmul.f32 %v4056_v9, %v4054_v6  ;;  %v2144_v32 = vmul.f32 %v4134_v11, %v1980_v35 }
 0x296   : > { %v1943_v40 = vpop.f32.mrf.mxu2  ;;  %v2042_v7 = vmul.f32 %v4064_v12, %v4110_v56  ;;  %v2126_v26 = vadd.f32 %v2118_v57, %v2100_v39 }
 0x297   : > { %v1944_v19 = vadd.f32 %v4031_v17, %v1943_v40  ;;  %v2024_v60 = vadd.f32 %v2016_v54, %v1990_v48  ;;  %v2075_v47 = vadd.f32 %v2067_v50, %v2049_v43  ;;  %v2125_v54 = vadd.f32 %v2117_v36, %v2099_v18 }
 0x298   : > { %v2152_v30 = vadd.f32 %v2144_v32, %v2126_v26 }
 0x299   : > { %v1957_v23 = vmul.f32 0.01, %v1944_v19 }
 0x29b   : > { %v4080_v33 = vmax.f32 %v1944_v19, %v1957_v23  ;;  %v4140_v19 = vld [vmem:[#allocation8 + $0x7] ss:$0 sm:$0xff]  ;;  %v2050_v23 = vadd.f32 %v2042_v7, %v2024_v60 }
 0x29c   : > { %v4092_v44 = vld [vmem:[#allocation2 + $0x40] sm:$0xff]  ;;  %v2169_v38 = vmul.f32 %v4140_v19, %v4038_v15  ;;  %v2170_v60 = vmul.f32 %v4140_v19, %v4045_v21 }
 0x29d   : > { %1973 = vst [vmem:[#allocation2 + $0x51] sm:$0xff] %v4080_v33  ;;  %v1991_v24 = vmul.f32 %v4052_v63, %v4092_v44  ;;  %v4124_v27 = vld [vmem:[#allocation2 + $0x42] sm:$0xff]  ;;  %v2068_v28 = vmul.f32 %v4078_v42, %v4092_v44  ;;  %v2018_v3 = vmul.f32 %v4056_v9, %v4080_v33  ;;  %v2145_v25 = vmul.f32 %v4134_v11, %v4092_v44 }
 0x29e   : > { %v1945_v37 = vpop.f32.mrf.mxu2  ;;  %v2043_v41 = vmul.f32 %v4064_v12, %v4124_v27  ;;  %v2095_v15 = vmul.f32 %v4104_v16, %v4080_v33 }
 0x29f   : > { %v1946_v51 = vadd.f32 %v4031_v17, %v1945_v37  ;;  %v2025_v4 = vadd.f32 %v2017_v52, %v1991_v24  ;;  %v2076_v35 = vadd.f32 %v2068_v28, %v2050_v23  ;;  %v2143_v37 = vmul.f32 %v4134_v11, %v4071_v22 }
 0x2a0   : > { %v2094_v24 = vmul.f32 %v4104_v16, %v4054_v6  ;;  %v2119_v22 = vmul.f32 %v4128_v61, %v4110_v56  ;;  %v2120_v28 = vmul.f32 %v4128_v61, %v4124_v27 }
 0x2a1   : > { %v1958_v10 = vmul.f32 0.01, %v1946_v51  ;;  %v2051_v14 = vadd.f32 %v2043_v41, %v2025_v4  ;;  %v2151_v52 = vadd.f32 %v2143_v37, %v2125_v54  ;;  %v4179_v4 = vld [vmem:[#allocation8 + $0x8] ss:$0 sm:$0xff] }
 0x2a2   : > { %v2102_v58 = vadd.f32 %v2094_v24, %v2076_v35  ;;  %v2196_v34 = vmul.f32 %v4179_v4, %v4110_v56 }
 0x2a3   : > { %v4119_v59 = vmax.f32 %v1946_v51, %v1958_v10  ;;  %v2101_v51 = vadd.f32 %v2093_v13, %v2075_v47  ;;  %v2177_v37 = vadd.f32 %v2169_v38, %v2151_v52 }
 0x2a4   : > { %v1982_v0 = vld [vmem:[#allocation2 + $0x50] sm:$0xff] }
 0x2a5   : > { %1974 = vst [vmem:[#allocation2 + $0x61] sm:$0xff] %v4119_v59  ;;  %v1992_v40 = vmul.f32 %v4052_v63, %v1982_v0  ;;  %v2069_v29 = vmul.f32 %v4078_v42, %v1982_v0  ;;  %v4156_v5 = vld [vmem:[#allocation2 + $0x52] sm:$0xff]  ;;  %v2127_v46 = vadd.f32 %v2119_v22, %v2101_v51  ;;  %v2146_v39 = vmul.f32 %v4134_v11, %v1982_v0 }
 0x2a6   : > { %v1948_v20 = vpop.f32.mrf.mxu2  ;;  %v2044_v10 = vmul.f32 %v4064_v12, %v4156_v5  ;;  %v2019_v47 = vmul.f32 %v4056_v9, %v4119_v59  ;;  %v2096_v41 = vmul.f32 %v4104_v16, %v4119_v59  ;;  %v2121_v23 = vmul.f32 %v4128_v61, %v4156_v5 }
 0x2a7   : > { %v1949_v2 = vadd.f32 %v4031_v17, %v1948_v20  ;;  %v2026_v49 = vadd.f32 %v2018_v3, %v1992_v40  ;;  %v2077_v53 = vadd.f32 %v2069_v29, %v2051_v14  ;;  %v2178_v40 = vadd.f32 %v2170_v60, %v2152_v30 }
 0x2a8   : > { %v2153_v57 = vadd.f32 %v2145_v25, %v2127_v46  ;;  %v2128_v29 = vadd.f32 %v2120_v28, %v2102_v58  ;;  %v2171_v14 = vmul.f32 %v4140_v19, %v4054_v6  ;;  %v2197_v6 = vmul.f32 %v4179_v4, %v4124_v27 }
 0x2a9   : > { %v1959_v48 = vmul.f32 0.01, %v1949_v2  ;;  %v2052_v8 = vadd.f32 %v2044_v10, %v2026_v49  ;;  %v2103_v7 = vadd.f32 %v2095_v15, %v2077_v53  ;;  %v2173_v22 = vmul.f32 %v4140_v19, %v4119_v59  ;;  %v3263_v59 = vld [vmem:[%s4297_s10] ss:$0 sm:$0xff] }
 0x2aa   : > { %v2154_v36 = vadd.f32 %v2146_v39, %v2128_v29  ;;  %v2179_v24 = vadd.f32 %v2171_v14, %v2153_v57  ;;  %v2198_v27 = vmul.f32 %v4179_v4, %v4156_v5 }
 0x2ab   : > { %v4164_v55 = vmax.f32 %v1949_v2, %v1959_v48  ;;  %v2129_v13 = vadd.f32 %v2121_v23, %v2103_v7  ;;  %v2204_v48 = vadd.f32 %v2196_v34, %v2178_v40 }
 0x2ac   : > { %v1983_v50 = vld [vmem:[#allocation2 + $0x60] sm:$0xff] }
 0x2ad   : > { %1975 = vst [vmem:[#allocation2 + $0x71] sm:$0xff] %v4164_v55  ;;  %v1993_v62 = vmul.f32 %v4052_v63, %v1983_v50  ;;  %v2070_v43 = vmul.f32 %v4078_v42, %v1983_v50  ;;  %v2035_v20 = vld [vmem:[#allocation2 + $0x62] sm:$0xff]  ;;  %v2147_v32 = vmul.f32 %v4134_v11, %v1983_v50  ;;  %v2216_v7 = vadd.f32 %v3263_v59, %v2204_v48 }
 0x2ae   : > { %v1950_v44 = vpop.f32.mrf.mxu2  ;;  %v2045_v26 = vmul.f32 %v4064_v12, %v2035_v20  ;;  %v2122_v51 = vmul.f32 %v4128_v61, %v2035_v20  ;;  %v2199_v46 = vmul.f32 %v4179_v4, %v2035_v20 }
 0x2af   : > { %v1951_v21 = vadd.f32 %v4031_v17, %v1950_v44  ;;  %v2078_v18 = vadd.f32 %v2070_v43, %v2052_v8  ;;  %v2027_v0 = vadd.f32 %v2019_v47, %v1993_v62  ;;  %v2195_v17 = vmul.f32 %v4179_v4, %v4098_v45 }
 0x2b0   : > { %v2155_v53 = vadd.f32 %v2147_v32, %v2129_v13  ;;  %v2172_v45 = vmul.f32 %v4140_v19, %v4080_v33  ;;  %v2020_v33 = vmul.f32 %v4056_v9, %v4164_v55  ;;  %v2205_v62 = vadd.f32 %v2197_v6, %v2179_v24  ;;  %v3264_v13 = vld [vmem:[#allocation2] sm:$0xff] }
 0x2b1   : > { %v1960_v2 = vmul.f32 0.01, %v1951_v21  ;;  %v2104_v3 = vadd.f32 %v2096_v41, %v2078_v18  ;;  %v2053_v54 = vadd.f32 %v2045_v26, %v2027_v0  ;;  %v2203_v15 = vadd.f32 %v2195_v17, %v2177_v37 }
 0x2b2   : > { %v2180_v25 = vadd.f32 %v2172_v45, %v2154_v36  ;;  %v2181_v60 = vadd.f32 %v2173_v22, %v2155_v53  ;;  %v2174_v9 = vmul.f32 %v4140_v19, %v4164_v55  ;;  %v2217_v57 = vadd.f32 %v3263_v59, %v2205_v62 }
 0x2b3   : > { %v1968_v35 = vmax.f32 %v1951_v21, %v1960_v2  ;;  %v2130_v10 = vadd.f32 %v2122_v51, %v2104_v3  ;;  %v2215_v18 = vadd.f32 %v3263_v59, %v2203_v15  ;;  %v2150_v36 = vmul.f32 %v3264_v13, %v4134_v11  ;;  %v3138_v51 = vld [vmem:[#allocation11 + $0x38] sm:$0xff] }
 0x2b4   : > { %v1984_v49 = vld [vmem:[#allocation2 + $0x70] sm:$0xff]  ;;  %v2206_v44 = vadd.f32 %v2198_v27, %v2180_v25  ;;  %v2207_v47 = vadd.f32 %v2199_v46, %v2181_v60  ;;  %v2225_v37 = vmax.f32 %v2217_v57, 0.0  ;;  %v2176_v53 = vmul.f32 %v4140_v19, %v3925_v1  ;;  %2391 = vmatpush.bf16.msrb.mxu3 %v3138_v51 }
 0x2b5   : > { %1976 = vst [vmem:[#allocation2 + $0x81] sm:$0xff] %v1968_v35  ;;  %v1994_v56 = vmul.f32 %v4052_v63, %v1984_v49  ;;  %v2071_v30 = vmul.f32 %v4078_v42, %v1984_v49  ;;  %v2148_v38 = vmul.f32 %v4134_v11, %v1984_v49  ;;  %v2097_v63 = vmul.f32 %v4104_v16, %v4164_v55  ;;  %v2036_v58 = vld [vmem:[#allocation2 + $0x72] sm:$0xff] }
 0x2b6   : > { %v2046_v28 = vmul.f32 %v4064_v12, %v2036_v58  ;;  %v2123_v39 = vmul.f32 %v4128_v61, %v2036_v58  ;;  %v2200_v21 = vmul.f32 %v4179_v4, %v2036_v58  ;;  %v2098_v20 = vmul.f32 %v4104_v16, %v1968_v35 }
 0x2b7   : > { %v2079_v50 = vadd.f32 %v2071_v30, %v2053_v54  ;;  %v2156_v52 = vadd.f32 %v2148_v38, %v2130_v10  ;;  %v2028_v8 = vadd.f32 %v2020_v33, %v1994_v56  ;;  %v2218_v2 = vadd.f32 %v3263_v59, %v2206_v44  ;;  %v3132_v44 = vld [vmem:[#allocation11 + $0x8] sm:$0xff] }
 0x2b8   : > { %v2224_v12 = vmax.f32 %v2216_v7, 0.0  ;;  %v2175_v34 = vmul.f32 %v4140_v19, %v1968_v35  ;;  %v2219_v14 = vadd.f32 %v3263_v59, %v2207_v47  ;;  %v2223_v26 = vmax.f32 %v2215_v18, 0.0 }
 0x2b9   : > { %v2105_v43 = vadd.f32 %v2097_v63, %v2079_v50  ;;  %v2182_v40 = vadd.f32 %v2174_v9, %v2156_v52  ;;  %v2054_v41 = vadd.f32 %v2046_v28, %v2028_v8  ;;  %v2226_v54 = vmax.f32 %v2218_v2, 0.0  ;;  %v3136_v50 = vld [vmem:[#allocation11 + $0x28] sm:$0xff]  ;;  %v3135_v52 = vld [vmem:[#allocation11 + $0x20] sm:$0xff] }
 0x2ba   : > { %v2231_v45 = vadd.f32 %v2224_v12, %v2223_v26  ;;  %v2202_v30 = vmul.f32 %v4179_v4, %v3949_v31  ;;  %v3134_v31 = vld [vmem:[#allocation11 + $0x18] sm:$0xff] }
 0x2bb   : > { %v2131_v29 = vadd.f32 %v2123_v39, %v2105_v43  ;;  %v2208_v3 = vadd.f32 %v2200_v21, %v2182_v40  ;;  %v3133_v43 = vld [vmem:[#allocation11 + $0x10] sm:$0xff]  ;;  %v3131_v40 = vld [vmem:[#allocation11] sm:$0xff] }
 0x2bc   : > { %v2062_v5 = vld [vmem:[#allocation2 + $0x80] sm:$0xff]  ;;  %v2232_v38 = vadd.f32 %v2231_v45, %v2225_v37 }
 0x2bd   : > { %v2072_v23 = vmul.f32 %v4078_v42, %v2062_v5  ;;  %v2149_v55 = vmul.f32 %v4134_v11, %v2062_v5  ;;  %v2114_v32 = vld [vmem:[#allocation2 + $0x82] sm:$0xff]  ;;  %v2220_v56 = vadd.f32 %v3263_v59, %v2208_v3  ;;  %v2262_v5 = vld [vmem:[#allocation9] sm:$0x1] }
 0x2be   : > { %v2124_v48 = vmul.f32 %v4128_v61, %v2114_v32  ;;  %v2201_v16 = vmul.f32 %v4179_v4, %v2114_v32  ;;  %v3137_v11 = vld [vmem:[#allocation11 + $0x30] sm:$0xff]  ;;  %v2227_v61 = vmax.f32 %v2219_v14, 0.0  ;;  %v2233_v33 = vadd.f32 %v2232_v38, %v2226_v54 }
 0x2bf   : > { %v2080_v0 = vadd.f32 %v2072_v23, %v2054_v41  ;;  %v2157_v17 = vadd.f32 %v2149_v55, %v2131_v29  ;;  %v2228_v25 = vmax.f32 %v2220_v56, 0.0  ;;  %2392 = vmatpush.bf16.msrb.mxu3 %v3137_v11 }
 0x2c0   : > { %v2234_v63 = vadd.f32 %v2233_v33, %v2227_v61 }
 0x2c1   : > { %v2106_v42 = vadd.f32 %v2098_v20, %v2080_v0  ;;  %v2183_v49 = vadd.f32 %v2175_v34, %v2157_v17 }
 0x2c2   : > { %v2235_v58 = vadd.f32 %v2234_v63, %v2228_v25 }
 0x2c3   : > { %v2132_v24 = vadd.f32 %v2124_v48, %v2106_v42  ;;  %v2209_v35 = vadd.f32 %v2201_v16, %v2183_v49  ;;  %2393 = vmatpush.bf16.msrb.mxu3 %v3136_v50 }
 0x2c5   : > { %v2158_v6 = vadd.f32 %v2150_v36, %v2132_v24  ;;  %v2221_v10 = vadd.f32 %v3263_v59, %v2209_v35 }
 0x2c7   : > { %v2184_v22 = vadd.f32 %v2176_v53, %v2158_v6  ;;  %v2229_v19 = vmax.f32 %v2221_v10, 0.0  ;;  %2394 = vmatpush.bf16.msrb.mxu3 %v3135_v52 }
 0x2c9   : > { %v2210_v1 = vadd.f32 %v2202_v30, %v2184_v22  ;;  %v2236_v27 = vadd.f32 %v2235_v58, %v2229_v19 }
 0x2cb   : > { %v2222_v15 = vadd.f32 %v3263_v59, %v2210_v1  ;;  %2395 = vmatpush.bf16.msrb.mxu3 %v3134_v31 }
 0x2cd   : > { %v2230_v60 = vmax.f32 %v2222_v15, 0.0 }
 0x2cf   : > { %v2237_v62 = vadd.f32 %v2236_v27, %v2230_v60  ;;  %2396 = vmatpush.bf16.msrb.mxu3 %v3133_v43 }
 0x2d1   : > { %v2238_v4 = vrot.slane %v2237_v62, 4 }
 0x2d3   : > { %v2239_v8 = vadd.f32 %v2238_v4, %v2237_v62  ;;  %2397 = vmatpush.bf16.msrb.mxu3 %v3132_v44 }
 0x2d5   : > { %v2240_v9 = vrot.slane %v2239_v8, 2 }
 0x2d7   : > { %v2241_v46 = vadd.f32 %v2240_v9, %v2239_v8  ;;  %2398 = vmatpush.bf16.msrb.mxu3 %v3131_v40 }
 0x2d9   : > { %v2242_v7 = vrot.slane %v2241_v46, 1 }
 0x2db   : > { %v2243_v28 = vadd.f32 %v2242_v7, %v2241_v46 }
 0x2dd   : > { %v2244_v59 = vmul.f32 0.015625, %v2243_v28 }
 0x2df   : > { %v2245_v39 = vpack.c.bf16 %v2244_v59, %v2244_v59 }
 0x2e1   : > { %2319 = vmatmul.bf16.vlgmr.msra.gmra.mxu3 %v2245_v39 }
 0x364   : > { %v2320_v21 = vpop.f32.mrf.mxu3 }
 0x365   : > { %v2321_v47 = vadd.f32 %v2320_v21, %v2262_v5 }
 0x367   : > { %2324 = vst [vmem:[%s611_s26] sm:$0x1] %v2321_v47  ;;  %v2325_v18 = vpack.c.bf16 %v2321_v47, %v2321_v47 }
 0x369   : > { %2399 = vmatmul.bf16.vlgmr.msrb.gmra.mxu3 %v2325_v18 }
 0x36c   : > { %v2322_v57 = vpop.f32.mrf.mxu3 }
 0x36d   : > { %3472 = shalt.err (!%p3469_p8)
}
 0x36e   : > { %3163 = dma.vmem_to_hbm [thread:$0]  (%p3691_p5), %s2421_s20, 16, %s2423_s29, %s2406_s21   ;;  %v2342_v41 = vld [vmem:[#allocation12] sm:$0x1] }
 0x36f   : > { %s4337_s30 = sld [smem:[#allocation34_spill]]  ;;  %s617_s17 = scalar_lea.vmem [#allocation15], %s4236_s16 }
 0x370   : > { %s2433_s28 = sshll.u32 %s617_s17, 4  ;;  %s2410_s24 = scalar_lea.sflag [#allocation16], %s4236_s16  ;;  %s2434_s28 = int_to_ptr.vmem [resolvable:$true] %s2433_s28 }
 0x375   : > { %s2431_s19 = scalar_lea.hbm %s4337_s30, %s3674_s25  ;;  %s3493_s25 = scalar_lea.hbm %s4337_s30, 2 }
 0x376   : > { %s2435_s15 = sshll.u32 %s2431_s19, 4  ;;  %s2436_s15 = int_to_ptr.hbm [resolvable:$true] %s2435_s15 }
 0x377   : > { %s3487_s5 = sshra.s32 %s2436_s15, 4  ;;  %s3488_s5 = int_to_ptr.hbm [resolvable:$true] %s3487_s5 }
 0x378   : > { %s3489_s23 = scalar_lea.hbm %s3488_s5, 1  ;;  %p3494_p12 = scmp.lt.s32.totalorder %s3488_s5, %s4337_s30 }
 0x379   : > { %p3490_p9 = scmp.ne.s32.totalorder %s3488_s5, %s3489_s23  ;;  %p3495_p13 = scmp.lt.s32.totalorder %s3493_s25, %s3489_s23 }
 0x37b   : > { %p3491_p10 = pnand %p3490_p9, %p3691_p5  ;;  %p3496_p0 = por %p3495_p13, %p3494_p12 }
 0x37d   : > { %p3492_p11 = pneg %p3491_p10 }
 0x37f   : > { %p3497_p1 = pnand %p3496_p0, %p3492_p11 }
 0x3ec   : > { %v2400_v23 = vpop.f32.mrf.mxu3 }
 0x3ed   : > { %v2401_v29 = vadd.f32 %v2400_v23, %v2342_v41 }
 0x3ef   : > { %2404 = vst [vmem:[%s617_s17] sm:$0x1] %v2401_v29 }
 0x3f0   : > { %3500 = shalt.err (!%p3497_p1)
}
 0x3f1   : > { %3164 = dma.vmem_to_hbm [thread:$0]  (%p3691_p5), %s2434_s28, 16, %s2436_s15, %s2410_s24  }
 0x3f4   : > { %v2402_v55 = vpop.f32.mrf.mxu3 }
 0x3f5 PF: > { %s4338_s16 = sld [smem:[#allocation25_spill]] }
 0x3f6   : > { %s4339_s26 = sld [smem:[#allocation23_spill]] }
 0x3fb   : > { %p3205_p2 = scmp.ge.s32.totalorder %s4338_s16, 2 }
 0x3fc   : > { %s2447_s19 = sand.u32 1, %s4339_s26  }
 0x3fd   : > { %p3187_p3 = pnand %p3205_p2, %p3695_p6  ;;  %s2448_s17 = scalar_lea.sflag [#allocation5], %s2447_s19 }
 0x3ff   : > { %p3188_p4 = pneg %p3187_p3 }
 0x401   : > { %3534 = dma.done.wait (%p3188_p4), %s2448_s17, 16  }
 0x402   : > { %3536 = vsyncadd (%p3188_p4), %s2448_s17, 4294967280  ;;  %s2457_s5 = scalar_lea.sflag [#allocation16], %s2447_s19 }
 0x403   : > { %3538 = dma.done.wait (%p3188_p4), %s2457_s5, 16  }
 0x404   : > { %3540 = vsyncadd (%p3188_p4), %s2457_s5, 4294967280  ;;  %s4341_s24 = sld [smem:[#allocation26_spill]]  ;;  %s4344_s21 = smov %s3547_s22 }
 0x405   : > { %s4342_s0 = sld [smem:[#allocation24_spill]] }
 0x406   : > { %s4343_s23 = sld [smem:[#allocation27_spill]] }
 0x40a   : > { %p34_p5 = scmp.ge.s32.totalorder %s4341_s24, 4  }
 0x40b   : > { %s4345_s22 = smov %s4342_s0 }
 0x40c   :  { %36 = sbr.rel (!%p34_p5) target bundleno = 15 (0xf), region = 168 }
 0x411   :  { %2462 = vsyncpa [#allocation4], 1 }
 0x412   :  { %2464 = vsyncpa [#allocation4 + $0x1], 1 }
 0x413   :  { %2465 = vsyncpa [#allocation7], 1 }
 0x414   :  { %2466 = vsyncpa [#allocation10], 1 }
 0x415   :  { %2467 = vsyncpa [#allocation13], 1 }
 0x416   :  { %2468 = vsyncpa [#allocation5], 1 }
 0x417   :  { %2470 = vsyncpa [#allocation5 + $0x1], 1 }
 0x418   :  { %2471 = vsyncpa [#allocation16], 1 }
 0x419   :  { %2473 = vsyncpa [#allocation16 + $0x1], 1 }

</bundles_post_ra>
